<compile_context>
chip_gen: v6e
topology: v6e:2x2x1
jax: 0.10.0
libtpu: 0.0.40
codegen_flags: <defaults>
</compile_context>

<pallas_src>
import math
import functools

import jax
import jax.numpy as jnp
from jax import lax
from jax.experimental import pallas as pl
from jax.experimental.pallas import tpu as pltpu


HIDDEN = 3072   # nn.Linear(args.lstm_dim*2, 3072)
LN_EPS = 1e-5   # nn.LayerNorm default eps


def _round_up(x, m):
    return (x + m - 1) // m * m


def _encoder_layer_kernel(x_ref, w1_ref, b1_ref, w2_ref, b2_ref,
                          gamma_ref, beta_ref, o_ref, *, eps, approx_gelu):
    # Grid: (row_tiles,).  Shapes per step:
    #   x_ref: (rt, D)        w1_ref: (D, HIDDEN)      b1_ref: (1, HIDDEN)
    #   w2_ref: (HIDDEN, D)   b2/gamma/beta: (1, D)    o_ref: (rt, D)
    # Weights/biases have constant block indices -> fetched once, VMEM-resident.

    # ffn: Linear(D -> HIDDEN), f32 accumulation on the MXU.
    h = jnp.dot(x_ref[...], w1_ref[...], preferred_element_type=jnp.float32)
    h = h + b1_ref[...].astype(jnp.float32)

    # GELU. Exact erf by default (PyTorch nn.GELU default); tanh approx optional (EUP).
    if approx_gelu:
        h = jax.nn.gelu(h, approximate=True)
    else:
        h = 0.5 * h * (1.0 + lax.erf(h * (1.0 / math.sqrt(2.0))))

    # output: Linear(HIDDEN -> D), f32 accumulation.
    y = jnp.dot(h.astype(w2_ref.dtype), w2_ref[...],
                preferred_element_type=jnp.float32)
    y = y + b2_ref[...].astype(jnp.float32)

    # LayerNorm over the (unpadded) feature axis D.
    mean = jnp.mean(y, axis=-1, keepdims=True)
    centered = y - mean
    var = jnp.mean(centered * centered, axis=-1, keepdims=True)
    y_norm = centered * lax.rsqrt(var + eps)
    out = y_norm * gamma_ref[...].astype(jnp.float32) + beta_ref[...].astype(jnp.float32)

    # Dropout(0.1) in eval mode == identity.
    o_ref[...] = out.astype(o_ref.dtype)


@functools.partial(jax.jit,
                   static_argnames=("row_tile", "compute_dtype", "approx_gelu"))
def encoder_layer(x, w1, b1, w2, b2, gamma, beta, *,
                  row_tile=1024, compute_dtype=None, approx_gelu=False):
    """x: (B, S, D) with D = lstm_dim*2.  Returns (B, S, D)."""
    B, S, D = x.shape
    assert w1.shape == (D, HIDDEN) and w2.shape == (HIDDEN, D)

    N = B * S
    # Row tile: multiple of 16 (bf16 packs two rows per sublane; harmless for f32).
    rt = min(row_tile, _round_up(N, 16))
    rt = _round_up(rt, 16)
    N_pad = _round_up(N, rt)               # only row padding (< rt rows), no lane padding

    x2 = x.reshape(N, D)
    if N_pad != N:
        x2 = jnp.pad(x2, ((0, N_pad - N), (0, 0)))
    b1r = b1.reshape(1, HIDDEN)
    b2r = b2.reshape(1, D)
    gammar = gamma.reshape(1, D)
    betar = beta.reshape(1, D)

    if compute_dtype is not None:          # bf16 storage/compute path for v6e / v7x MXU
        x2 = x2.astype(compute_dtype)
        w1 = w1.astype(compute_dtype)
        w2 = w2.astype(compute_dtype)

    n_row_steps = N_pad // rt
    grid = (n_row_steps,)

    kernel = functools.partial(_encoder_layer_kernel, eps=LN_EPS,
                               approx_gelu=approx_gelu)

    cost = pl.CostEstimate(
        flops=int(4 * N_pad * D * HIDDEN),                 # two matmuls, real D
        transcendentals=int(N_pad * HIDDEN),               # erf / tanh
        bytes_accessed=int(x2.nbytes + N_pad * D * x.dtype.itemsize
                           + w1.nbytes + w2.nbytes
                           + b1r.nbytes + b2r.nbytes + gammar.nbytes + betar.nbytes),
    )

    out2 = pl.pallas_call(
        kernel,
        out_shape=jax.ShapeDtypeStruct((N_pad, D), x.dtype),
        grid_spec=pltpu.PrefetchScalarGridSpec(
            num_scalar_prefetch=0,
            grid=grid,
            in_specs=[
                pl.BlockSpec((rt, D), lambda i: (i, 0)),          # x rows (streamed)
                pl.BlockSpec((D, HIDDEN), lambda i: (0, 0)),      # w1 (resident)
                pl.BlockSpec((1, HIDDEN), lambda i: (0, 0)),      # b1 (resident)
                pl.BlockSpec((HIDDEN, D), lambda i: (0, 0)),      # w2 (resident)
                pl.BlockSpec((1, D), lambda i: (0, 0)),           # b2 (resident)
                pl.BlockSpec((1, D), lambda i: (0, 0)),           # gamma (resident)
                pl.BlockSpec((1, D), lambda i: (0, 0)),           # beta (resident)
            ],
            out_specs=pl.BlockSpec((rt, D), lambda i: (i, 0)),
        ),
        compiler_params=pltpu.CompilerParams(
            dimension_semantics=("parallel",),
            # Room for the (rt, 3072) f32 intermediate at rt=1024 on every generation
            # (48 MiB < v7x's 64 MiB physical; above the 32 MiB default scoped limit).
            vmem_limit_bytes=48 * 1024 * 1024,
        ),
        cost_estimate=cost,
    )(x2, w1, b1r, w2, b2r, gammar, betar)

    if N_pad != N:
        out2 = out2[:N]
    return out2.reshape(B, S, D)


def init_params(key, d_model):
    """Matches nn.Linear / nn.LayerNorm shapes and init ranges.

    nn.Linear(in, out): weight (out, in), bias (out,) ~ U(-1/sqrt(in), 1/sqrt(in)).
    Weights stored transposed (in, out) for row-major matmul; biases as (1, out).
    """
    k1, k2, k3, k4 = jax.random.split(key, 4)
    bound1 = 1.0 / math.sqrt(d_model)
    bound2 = 1.0 / math.sqrt(HIDDEN)
    w1 = jax.random.uniform(k1, (d_model, HIDDEN), jnp.float32, -bound1, bound1)
    b1 = jax.random.uniform(k2, (1, HIDDEN), jnp.float32, -bound1, bound1)
    w2 = jax.random.uniform(k3, (HIDDEN, d_model), jnp.float32, -bound2, bound2)
    b2 = jax.random.uniform(k4, (1, d_model), jnp.float32, -bound2, bound2)
    gamma = jnp.ones((1, d_model), jnp.float32)    # nn.LayerNorm weight init = 1
    beta = jnp.zeros((1, d_model), jnp.float32)    # nn.LayerNorm bias init = 0
    return w1, b1, w2, b2, gamma, beta


def reference(x, w1, b1, w2, b2, gamma, beta):
    h = x @ w1 + b1
    h = 0.5 * h * (1.0 + lax.erf(h / math.sqrt(2.0)))
    y = h @ w2 + b2
    mean = jnp.mean(y, axis=-1, keepdims=True)
    var = jnp.mean((y - mean) ** 2, axis=-1, keepdims=True)
    y = (y - mean) * lax.rsqrt(var + LN_EPS)
    return y * gamma + beta


if __name__ == "__main__":
    # args.lstm_dim = 16 -> D = lstm_dim * 2 = 32
    batch, seq, lstm_dim = 2, 8, 16
    d_model = lstm_dim * 2

    key = jax.random.PRNGKey(0)
    k_x, k_p = jax.random.split(key)
    x = jax.random.normal(k_x, (batch, seq, d_model), jnp.float32)
    params = init_params(k_p, d_model)

    out = encoder_layer(x, *params)
    out = jax.block_until_ready(out)

    ref = reference(x.reshape(-1, d_model), *params).reshape(batch, seq, d_model)
    assert out.shape == (batch, seq, d_model)
    assert jnp.allclose(out, ref, atol=1e-4, rtol=1e-4), "mismatch vs reference"

    print("KERNEL_OK")
</pallas_src>

<mosaic_0001>
module attributes {stable_mosaic.version = 11 : i64} {
  func.func @_encoder_layer_kernel(%arg0: i32, %arg1: memref<16x32xf32, #tpu.memory_space<vmem>>, %arg2: memref<32x3072xf32, #tpu.memory_space<vmem>>, %arg3: memref<1x3072xf32, #tpu.memory_space<vmem>>, %arg4: memref<3072x32xf32, #tpu.memory_space<vmem>>, %arg5: memref<1x32xf32, #tpu.memory_space<vmem>>, %arg6: memref<1x32xf32, #tpu.memory_space<vmem>>, %arg7: memref<1x32xf32, #tpu.memory_space<vmem>>, %arg8: memref<16x32xf32, #tpu.memory_space<vmem>>) attributes {dimension_semantics = [#tpu.dimension_semantics<parallel>], iteration_bounds = array<i64: 1>, scalar_prefetch = 0 : i64, scratch_operands = 0 : i64, tpu.core_type = #tpu.core_type<tc>, window_params = [{transform_indices = @transform_0, window_bounds = array<i64: 16, 32>}, {pipeline_mode = #tpu.pipeline_mode<synchronous>, transform_indices = @transform_1, window_bounds = array<i64: 32, 3072>}, {pipeline_mode = #tpu.pipeline_mode<synchronous>, transform_indices = @transform_2, window_bounds = array<i64: 1, 3072>}, {pipeline_mode = #tpu.pipeline_mode<synchronous>, transform_indices = @transform_3, window_bounds = array<i64: 3072, 32>}, {pipeline_mode = #tpu.pipeline_mode<synchronous>, transform_indices = @transform_4, window_bounds = array<i64: 1, 32>}, {pipeline_mode = #tpu.pipeline_mode<synchronous>, transform_indices = @transform_5, window_bounds = array<i64: 1, 32>}, {pipeline_mode = #tpu.pipeline_mode<synchronous>, transform_indices = @transform_6, window_bounds = array<i64: 1, 32>}, {transform_indices = @transform_7, window_bounds = array<i64: 16, 32>}]} {
    %c0 = arith.constant 0 : index
    %c0_0 = arith.constant 0 : index
    %0 = vector.load %arg1[%c0, %c0_0] : memref<16x32xf32, #tpu.memory_space<vmem>>, vector<16x32xf32>
    %c0_1 = arith.constant 0 : index
    %c0_2 = arith.constant 0 : index
    %1 = vector.load %arg2[%c0_1, %c0_2] : memref<32x3072xf32, #tpu.memory_space<vmem>>, vector<32x3072xf32>
    %cst = arith.constant dense<0.000000e+00> : vector<16x3072xf32>
    %2 = tpu.matmul %0, %1, %cst {dimension_numbers = #tpu.dot_dimension_numbers<[1], [0], [0], [1], [0, 0, 1, 1], [], []>} : vector<16x32xf32>, vector<32x3072xf32>, vector<16x3072xf32> -> vector<16x3072xf32>
    %c0_3 = arith.constant 0 : index
    %c0_4 = arith.constant 0 : index
    %3 = vector.load %arg3[%c0_3, %c0_4] : memref<1x3072xf32, #tpu.memory_space<vmem>>, vector<1x3072xf32>
    %4 = vector.broadcast %3 : vector<1x3072xf32> to vector<16x3072xf32>
    %5 = arith.addf %2, %4 : vector<16x3072xf32>
    %cst_5 = arith.constant 5.000000e-01 : f32
    %6 = vector.broadcast %cst_5 : f32 to vector<16x3072xf32>
    %7 = arith.mulf %6, %5 : vector<16x3072xf32>
    %cst_6 = arith.constant 0.707106769 : f32
    %8 = vector.broadcast %cst_6 : f32 to vector<16x3072xf32>
    %9 = arith.mulf %5, %8 : vector<16x3072xf32>
    %10 = math.erf %9 : vector<16x3072xf32>
    %cst_7 = arith.constant 1.000000e+00 : f32
    %11 = vector.broadcast %cst_7 : f32 to vector<16x3072xf32>
    %12 = arith.addf %11, %10 : vector<16x3072xf32>
    %13 = arith.mulf %7, %12 : vector<16x3072xf32>
    %c0_8 = arith.constant 0 : index
    %c0_9 = arith.constant 0 : index
    %14 = vector.load %arg4[%c0_8, %c0_9] : memref<3072x32xf32, #tpu.memory_space<vmem>>, vector<3072x32xf32>
    %cst_10 = arith.constant dense<0.000000e+00> : vector<16x32xf32>
    %15 = tpu.matmul %13, %14, %cst_10 {dimension_numbers = #tpu.dot_dimension_numbers<[1], [0], [0], [1], [0, 0, 1, 1], [], []>} : vector<16x3072xf32>, vector<3072x32xf32>, vector<16x32xf32> -> vector<16x32xf32>
    %c0_11 = arith.constant 0 : index
    %c0_12 = arith.constant 0 : index
    %16 = vector.load %arg5[%c0_11, %c0_12] : memref<1x32xf32, #tpu.memory_space<vmem>>, vector<1x32xf32>
    %17 = vector.broadcast %16 : vector<1x32xf32> to vector<16x32xf32>
    %18 = arith.addf %15, %17 : vector<16x32xf32>
    %cst_13 = arith.constant dense<0.000000e+00> : vector<16xf32>
    %19 = vector.multi_reduction <add>, %18, %cst_13 [1] : vector<16x32xf32> to vector<16xf32>
    %20 = vector.shape_cast %19 : vector<16xf32> to vector<16x1xf32>
    %cst_14 = arith.constant 3.200000e+01 : f32
    %21 = vector.broadcast %cst_14 : f32 to vector<16x1xf32>
    %22 = arith.divf %20, %21 : vector<16x1xf32>
    %23 = vector.broadcast %22 : vector<16x1xf32> to vector<16x32xf32>
    %24 = arith.subf %18, %23 : vector<16x32xf32>
    %25 = arith.mulf %24, %24 : vector<16x32xf32>
    %cst_15 = arith.constant dense<0.000000e+00> : vector<16xf32>
    %26 = vector.multi_reduction <add>, %25, %cst_15 [1] : vector<16x32xf32> to vector<16xf32>
    %27 = vector.shape_cast %26 : vector<16xf32> to vector<16x1xf32>
    %cst_16 = arith.constant 3.200000e+01 : f32
    %28 = vector.broadcast %cst_16 : f32 to vector<16x1xf32>
    %29 = arith.divf %27, %28 : vector<16x1xf32>
    %cst_17 = arith.constant 9.99999974E-6 : f32
    %30 = vector.broadcast %cst_17 : f32 to vector<16x1xf32>
    %31 = arith.addf %29, %30 : vector<16x1xf32>
    %32 = math.rsqrt %31 : vector<16x1xf32>
    %33 = vector.broadcast %32 : vector<16x1xf32> to vector<16x32xf32>
    %34 = arith.mulf %24, %33 : vector<16x32xf32>
    %c0_18 = arith.constant 0 : index
    %c0_19 = arith.constant 0 : index
    %35 = vector.load %arg6[%c0_18, %c0_19] : memref<1x32xf32, #tpu.memory_space<vmem>>, vector<1x32xf32>
    %36 = vector.broadcast %35 : vector<1x32xf32> to vector<16x32xf32>
    %37 = arith.mulf %34, %36 : vector<16x32xf32>
    %c0_20 = arith.constant 0 : index
    %c0_21 = arith.constant 0 : index
    %38 = vector.load %arg7[%c0_20, %c0_21] : memref<1x32xf32, #tpu.memory_space<vmem>>, vector<1x32xf32>
    %39 = vector.broadcast %38 : vector<1x32xf32> to vector<16x32xf32>
    %40 = arith.addf %37, %39 : vector<16x32xf32>
    %c0_22 = arith.constant 0 : index
    %c0_23 = arith.constant 0 : index
    %41 = vector.load %arg8[%c0_22, %c0_23] : memref<16x32xf32, #tpu.memory_space<vmem>>, vector<16x32xf32>
    tpu.vector_store %arg8[%c0_22, %c0_23], %40 {strides = array<i32>} : memref<16x32xf32, #tpu.memory_space<vmem>>, vector<16x32xf32>,
    return
  }
  func.func @transform_0(%arg0: i32) -> (i32, i32) {
    %c0_i32 = arith.constant 0 : i32
    %c0_i32_0 = arith.constant 0 : i32
    return %arg0, %c0_i32 : i32, i32
  }
  func.func @transform_1(%arg0: i32) -> (i32, i32) {
    %c0_i32 = arith.constant 0 : i32
    %c0_i32_0 = arith.constant 0 : i32
    %c0_i32_1 = arith.constant 0 : i32
    return %c0_i32, %c0_i32_0 : i32, i32
  }
  func.func @transform_2(%arg0: i32) -> (i32, i32) {
    %c0_i32 = arith.constant 0 : i32
    %c0_i32_0 = arith.constant 0 : i32
    %c0_i32_1 = arith.constant 0 : i32
    return %c0_i32, %c0_i32_0 : i32, i32
  }
  func.func @transform_3(%arg0: i32) -> (i32, i32) {
    %c0_i32 = arith.constant 0 : i32
    %c0_i32_0 = arith.constant 0 : i32
    %c0_i32_1 = arith.constant 0 : i32
    return %c0_i32, %c0_i32_0 : i32, i32
  }
  func.func @transform_4(%arg0: i32) -> (i32, i32) {
    %c0_i32 = arith.constant 0 : i32
    %c0_i32_0 = arith.constant 0 : i32
    %c0_i32_1 = arith.constant 0 : i32
    return %c0_i32, %c0_i32_0 : i32, i32
  }
  func.func @transform_5(%arg0: i32) -> (i32, i32) {
    %c0_i32 = arith.constant 0 : i32
    %c0_i32_0 = arith.constant 0 : i32
    %c0_i32_1 = arith.constant 0 : i32
    return %c0_i32, %c0_i32_0 : i32, i32
  }
  func.func @transform_6(%arg0: i32) -> (i32, i32) {
    %c0_i32 = arith.constant 0 : i32
    %c0_i32_0 = arith.constant 0 : i32
    %c0_i32_1 = arith.constant 0 : i32
    return %c0_i32, %c0_i32_0 : i32, i32
  }
  func.func @transform_7(%arg0: i32) -> (i32, i32) {
    %c0_i32 = arith.constant 0 : i32
    %c0_i32_0 = arith.constant 0 : i32
    return %arg0, %c0_i32 : i32, i32
  }
}

</mosaic_0001>

<bundles_post_ra>
// kernel: encoder_layer.1
= control target key start
LH: loop header
LB: loop body
LE: loop exit
PB: predicated region body
PF: predicated region fallthrough
CT: control target
= control target key end

     0   :  { %vm251_vm0 = vcmask 261120   ;;  %v3385_v17 = vmov 0.0   ;;  %s5296_s0 = inlined_call_operand.vmem [shape: f32[16,32], index: 0, kind: input, shape index: {}]   ;;  %s5297_s1 = inlined_call_operand.vmem [shape: f32[32,3072], index: 1, kind: input, shape index: {}]   ;;  %s5298_s2 = inlined_call_operand.vmem [shape: f32[1,3072], index: 2, kind: input, shape index: {}]   ;;  %s5299_s3 = inlined_call_operand.vmem [shape: f32[3072,32], index: 3, kind: input, shape index: {}]   ;;  %s5300_s4 = inlined_call_operand.vmem [shape: f32[1,32], index: 4, kind: input, shape index: {}]   ;;  %s5301_s5 = inlined_call_operand.vmem [shape: f32[1,32], index: 5, kind: input, shape index: {}]   ;;  %s5302_s6 = inlined_call_operand.vmem [shape: f32[1,32], index: 6, kind: input, shape index: {}]   ;;  %s5303_s7 = inlined_call_operand.hbm [shape: f32[16,32], index: 7, kind: output, shape index: {}]  }
   0x1   :  { %v102_v0 = vld [vmem:[%s5297_s1 + $0x248] sm:$0xff]  ;;  %v104_v1 = vld [vmem:[%s5297_s1 + $0x258] sm:$0xff]  ;;  %v101_v2 = vld [vmem:[%s5297_s1 + $0x240] sm:$0xff]  ;;  %322 = vmatprep.mubr.f32.mxu0 %v3385_v17  ;;  %399 = vmatprep.mubr.f32.mxu1 %v3385_v17 }
   0x2   :  { %282 = vmatprep.subr.mxu0 %v102_v0  ;;  %359 = vmatprep.subr.mxu1 %v104_v1  ;;  %v103_v3 = vld [vmem:[%s5297_s1 + $0x250] sm:$0xff]  ;;  %v78_v4 = vld [vmem:[%s5297_s1 + $0x188] sm:$0xff]  ;;  %v80_v5 = vld [vmem:[%s5297_s1 + $0x198] sm:$0xff] }
   0x3   :  { %283 = vmatpush1.msra.mxu0 %v101_v2  ;;  %360 = vmatpush1.msra.mxu1 %v103_v3  ;;  %v77_v6 = vld [vmem:[%s5297_s1 + $0x180] sm:$0xff]  ;;  %v79_v7 = vld [vmem:[%s5297_s1 + $0x190] sm:$0xff]  ;;  %v54_v8 = vld [vmem:[%s5297_s1 + $0xc8] sm:$0xff] }
   0x4   :  { %284 = vmatprep.subr.mxu0 %v78_v4  ;;  %361 = vmatprep.subr.mxu1 %v80_v5  ;;  %v56_v9 = vld [vmem:[%s5297_s1 + $0xd8] sm:$0xff]  ;;  %v53_v10 = vld [vmem:[%s5297_s1 + $0xc0] sm:$0xff]  ;;  %v55_v11 = vld [vmem:[%s5297_s1 + $0xd0] sm:$0xff] }
   0x5   :  { %285 = vmatpush1.msra.mxu0 %v77_v6  ;;  %362 = vmatpush1.msra.mxu1 %v79_v7  ;;  %v30_v12 = vld [vmem:[%s5297_s1 + $0x8] sm:$0xff]  ;;  %v32_v13 = vld [vmem:[%s5297_s1 + $0x18] sm:$0xff]  ;;  %v29_v14 = vld [vmem:[%s5297_s1] sm:$0xff] }
   0x6   :  { %286 = vmatprep.subr.mxu0 %v54_v8  ;;  %363 = vmatprep.subr.mxu1 %v56_v9  ;;  %v31_v15 = vld [vmem:[%s5297_s1 + $0x10] sm:$0xff]  ;;  %v3480_v16 = vld [vmem:[%s5296_s0] sm:$0xff]  ;;  %v106_v18 = vld [vmem:[%s5297_s1 + $0x268] sm:$0xff] }
   0x7   :  { %287 = vmatpush1.msra.mxu0 %v53_v10  ;;  %364 = vmatpush1.msra.mxu1 %v55_v11  ;;  %v105_v19 = vld [vmem:[%s5297_s1 + $0x260] sm:$0xff]  ;;  %v82_v20 = vld [vmem:[%s5297_s1 + $0x1a8] sm:$0xff]  ;;  %v108_v21 = vld [vmem:[%s5297_s1 + $0x278] sm:$0xff] }
   0x8   :  { %288 = vmatprep.subr.mxu0 %v30_v12  ;;  %365 = vmatprep.subr.mxu1 %v32_v13  ;;  %v3504_v22 = vld [vmem:[%s5296_s0 + $0x8] sm:$0xff]  ;;  %v81_v23 = vld [vmem:[%s5297_s1 + $0x1a0] sm:$0xff]  ;;  %v107_v24 = vld [vmem:[%s5297_s1 + $0x270] sm:$0xff] }
   0x9   :  { %289 = vmatpush1.msra.mxu0 %v29_v14  ;;  %366 = vmatpush1.msra.mxu1 %v31_v15  ;;  %v58_v25 = vld [vmem:[%s5297_s1 + $0xe8] sm:$0xff]  ;;  %v84_v26 = vld [vmem:[%s5297_s1 + $0x1b8] sm:$0xff]  ;;  %v57_v27 = vld [vmem:[%s5297_s1 + $0xe0] sm:$0xff] }
   0xa   :  { %2776 = vmatmul.mubr.msk.f32.vlgmr.msra.gmra.mxu0 %vm251_vm0, %v3480_v16  ;;  %2778 = vmatmul.mubr.msk.f32.vlgmr.msra.gmra.mxu1 %vm251_vm0, %v3480_v16  ;;  %v83_v28 = vld [vmem:[%s5297_s1 + $0x1b0] sm:$0xff]  ;;  %v34_v29 = vld [vmem:[%s5297_s1 + $0x28] sm:$0xff]  ;;  %v60_v30 = vld [vmem:[%s5297_s1 + $0xf8] sm:$0xff] }
   0xb   :  { %328 = vmatprep.mubr.f32.mxu0 %v3385_v17  ;;  %436 = vmatprep.subr.mxu0 %v106_v18  ;;  %v33_v31 = vld [vmem:[%s5297_s1 + $0x20] sm:$0xff]  ;;  %v59_v32 = vld [vmem:[%s5297_s1 + $0xf0] sm:$0xff]  ;;  %v36_v33 = vld [vmem:[%s5297_s1 + $0x38] sm:$0xff] }
   0xc   :  { %437 = vmatpush1.msra.mxu0 %v105_v19  ;;  %405 = vmatprep.mubr.f32.mxu1 %v3385_v17  ;;  %v35_v34 = vld [vmem:[%s5297_s1 + $0x30] sm:$0xff]  ;;  %v110_v35 = vld [vmem:[%s5297_s1 + $0x288] sm:$0xff]  ;;  %v109_v36 = vld [vmem:[%s5297_s1 + $0x280] sm:$0xff] }
   0xd   :  { %438 = vmatprep.subr.mxu0 %v82_v20  ;;  %513 = vmatprep.subr.mxu1 %v108_v21  ;;  %v112_v37 = vld [vmem:[%s5297_s1 + $0x298] sm:$0xff]  ;;  %v86_v38 = vld [vmem:[%s5297_s1 + $0x1c8] sm:$0xff]  ;;  %v111_v39 = vld [vmem:[%s5297_s1 + $0x290] sm:$0xff] }
   0xe   :  { %2777 = vmatmul.mubr.msk.f32.gmra.mxu0 %vm251_vm0, %v3504_v22  ;;  %2779 = vmatmul.mubr.msk.f32.gmra.mxu1 %vm251_vm0, %v3504_v22  ;;  %v85_v40 = vld [vmem:[%s5297_s1 + $0x1c0] sm:$0xff]  ;;  %v62_v41 = vld [vmem:[%s5297_s1 + $0x108] sm:$0xff]  ;;  %v88_v42 = vld [vmem:[%s5297_s1 + $0x1d8] sm:$0xff] }
   0xf   :  { %439 = vmatpush1.msra.mxu0 %v81_v23  ;;  %514 = vmatpush1.msra.mxu1 %v107_v24  ;;  %v61_v43 = vld [vmem:[%s5297_s1 + $0x100] sm:$0xff]  ;;  %v87_v44 = vld [vmem:[%s5297_s1 + $0x1d0] sm:$0xff]  ;;  %v38_v45 = vld [vmem:[%s5297_s1 + $0x48] sm:$0xff] }
  0x10   :  { %440 = vmatprep.subr.mxu0 %v58_v25  ;;  %515 = vmatprep.subr.mxu1 %v84_v26  ;;  %v64_v46 = vld [vmem:[%s5297_s1 + $0x118] sm:$0xff]  ;;  %v37_v47 = vld [vmem:[%s5297_s1 + $0x40] sm:$0xff]  ;;  %v63_v48 = vld [vmem:[%s5297_s1 + $0x110] sm:$0xff] }
  0x11   :  { %441 = vmatpush1.msra.mxu0 %v57_v27  ;;  %516 = vmatpush1.msra.mxu1 %v83_v28  ;;  %v40_v49 = vld [vmem:[%s5297_s1 + $0x58] sm:$0xff]  ;;  %v39_v50 = vld [vmem:[%s5297_s1 + $0x50] sm:$0xff]  ;;  %v114_v51 = vld [vmem:[%s5297_s1 + $0x2a8] sm:$0xff] }
  0x12   :  { %442 = vmatprep.subr.mxu0 %v34_v29  ;;  %517 = vmatprep.subr.mxu1 %v60_v30  ;;  %v113_v52 = vld [vmem:[%s5297_s1 + $0x2a0] sm:$0xff]  ;;  %v116_v53 = vld [vmem:[%s5297_s1 + $0x2b8] sm:$0xff]  ;;  %v90_v54 = vld [vmem:[%s5297_s1 + $0x1e8] sm:$0xff] }
  0x13   :  { %443 = vmatpush1.msra.mxu0 %v33_v31  ;;  %476 = vmatprep.mubr.f32.mxu0 %v3385_v17  ;;  %v115_v55 = vld [vmem:[%s5297_s1 + $0x2b0] sm:$0xff]  ;;  %v89_v56 = vld [vmem:[%s5297_s1 + $0x1e0] sm:$0xff]  ;;  %v66_v57 = vld [vmem:[%s5297_s1 + $0x128] sm:$0xff] }
  0x14   :  { %518 = vmatpush1.msra.mxu1 %v59_v32  ;;  %2780 = vmatmul.mubr.msk.f32.vlgmr.msra.gmra.mxu0 %vm251_vm0, %v3480_v16  ;;  %v92_v58 = vld [vmem:[%s5297_s1 + $0x1f8] sm:$0xff] }
  0x15   :  { %519 = vmatprep.subr.mxu1 %v36_v33  ;;  %553 = vmatprep.mubr.f32.mxu1 %v3385_v17 }
  0x16   :  { %520 = vmatpush1.msra.mxu1 %v35_v34  ;;  %482 = vmatprep.mubr.f32.mxu0 %v3385_v17 }
  0x17   :  { %2782 = vmatmul.mubr.msk.f32.vlgmr.msra.gmra.mxu1 %vm251_vm0, %v3480_v16  ;;  %590 = vmatprep.subr.mxu0 %v110_v35 }
  0x18   :  { %2781 = vmatmul.mubr.msk.f32.gmra.mxu0 %vm251_vm0, %v3504_v22  ;;  %559 = vmatprep.mubr.f32.mxu1 %v3385_v17 }
  0x19   :  { %591 = vmatpush1.msra.mxu0 %v109_v36  ;;  %667 = vmatprep.subr.mxu1 %v112_v37 }
  0x1a   :  { %592 = vmatprep.subr.mxu0 %v86_v38  ;;  %668 = vmatpush1.msra.mxu1 %v111_v39 }
  0x1b   :  { %2783 = vmatmul.mubr.msk.f32.gmra.mxu1 %vm251_vm0, %v3504_v22  ;;  %593 = vmatpush1.msra.mxu0 %v85_v40 }
  0x1c   :  { %594 = vmatprep.subr.mxu0 %v62_v41  ;;  %669 = vmatprep.subr.mxu1 %v88_v42 }
  0x1d   :  { %595 = vmatpush1.msra.mxu0 %v61_v43  ;;  %670 = vmatpush1.msra.mxu1 %v87_v44 }
  0x1e   :  { %596 = vmatprep.subr.mxu0 %v38_v45  ;;  %671 = vmatprep.subr.mxu1 %v64_v46 }
  0x1f   :  { %597 = vmatpush1.msra.mxu0 %v37_v47  ;;  %630 = vmatprep.mubr.f32.mxu0 %v3385_v17 }
  0x20   :  { %672 = vmatpush1.msra.mxu1 %v63_v48  ;;  %2784 = vmatmul.mubr.msk.f32.vlgmr.msra.gmra.mxu0 %vm251_vm0, %v3480_v16 }
  0x21   :  { %673 = vmatprep.subr.mxu1 %v40_v49  ;;  %707 = vmatprep.mubr.f32.mxu1 %v3385_v17 }
  0x22   :  { %674 = vmatpush1.msra.mxu1 %v39_v50  ;;  %636 = vmatprep.mubr.f32.mxu0 %v3385_v17 }
  0x23   :  { %2786 = vmatmul.mubr.msk.f32.vlgmr.msra.gmra.mxu1 %vm251_vm0, %v3480_v16  ;;  %744 = vmatprep.subr.mxu0 %v114_v51 }
  0x24   :  { %2785 = vmatmul.mubr.msk.f32.gmra.mxu0 %vm251_vm0, %v3504_v22  ;;  %713 = vmatprep.mubr.f32.mxu1 %v3385_v17 }
  0x25   :  { %745 = vmatpush1.msra.mxu0 %v113_v52  ;;  %821 = vmatprep.subr.mxu1 %v116_v53 }
  0x26   :  { %12 = vsyncpa [#allocation3], 0  ;;  %746 = vmatprep.subr.mxu0 %v90_v54  ;;  %822 = vmatpush1.msra.mxu1 %v115_v55  ;;  %v65_v59 = vld [vmem:[%s5297_s1 + $0x120] sm:$0xff]  ;;  %v91_v60 = vld [vmem:[%s5297_s1 + $0x1f0] sm:$0xff]  ;;  %s3386_s20 = smov [#allocation2]  }
  0x27   :  { %2787 = vmatmul.mubr.msk.f32.gmra.mxu1 %vm251_vm0, %v3504_v22  ;;  %747 = vmatpush1.msra.mxu0 %v89_v56  ;;  %v42_v61 = vld [vmem:[%s5297_s1 + $0x68] sm:$0xff]  ;;  %v68_v62 = vld [vmem:[%s5297_s1 + $0x138] sm:$0xff]  ;;  %v41_v63 = vld [vmem:[%s5297_s1 + $0x60] sm:$0xff]  ;;  %s2765_s21 = sshll.u32 %s3386_s20, 4  ;;  %s2766_s21 = int_to_ptr.vmem [resolvable:$true] %s2765_s21 }
  0x28   :  { %748 = vmatprep.subr.mxu0 %v66_v57  ;;  %823 = vmatprep.subr.mxu1 %v92_v58  ;;  %v67_v0 = vld [vmem:[%s5297_s1 + $0x130] sm:$0xff]  ;;  %v44_v1 = vld [vmem:[%s5297_s1 + $0x78] sm:$0xff]  ;;  %v118_v3 = vld [vmem:[%s5297_s1 + $0x2c8] sm:$0xff]  ;;  %s3363_s22 = scalar_lea.vmem %s2766_s21, 256  ;;  %p3368_p1 = scmp.lt.s32.totalorder %s2766_s21, %s2766_s21 }
  0x29   :  { %749 = vmatpush1.msra.mxu0 %v65_v59  ;;  %824 = vmatpush1.msra.mxu1 %v91_v60  ;;  %v43_v2 = vld [vmem:[%s5297_s1 + $0x70] sm:$0xff]  ;;  %v117_v4 = vld [vmem:[%s5297_s1 + $0x2c0] sm:$0xff]  ;;  %v120_v5 = vld [vmem:[%s5297_s1 + $0x2d8] sm:$0xff]  ;;  %p3364_p0 = scmp.ne.s32.totalorder %s2766_s21, %s3363_s22  ;;  %p3369_p2 = scmp.lt.s32.totalorder %s3363_s22, %s3363_s22 }
  0x2a   :  { %750 = vmatprep.subr.mxu0 %v42_v61  ;;  %825 = vmatprep.subr.mxu1 %v68_v62  ;;  %v94_v6 = vld [vmem:[%s5297_s1 + $0x208] sm:$0xff]  ;;  %v119_v7 = vld [vmem:[%s5297_s1 + $0x2d0] sm:$0xff]  ;;  %v93_v8 = vld [vmem:[%s5297_s1 + $0x200] sm:$0xff] }
  0x2b   :  { %751 = vmatpush1.msra.mxu0 %v41_v63  ;;  %784 = vmatprep.mubr.f32.mxu0 %v3385_v17  ;;  %v70_v9 = vld [vmem:[%s5297_s1 + $0x148] sm:$0xff]  ;;  %v96_v10 = vld [vmem:[%s5297_s1 + $0x218] sm:$0xff]  ;;  %v69_v11 = vld [vmem:[%s5297_s1 + $0x140] sm:$0xff]  ;;  %p3370_p3 = por %p3369_p2, %p3368_p1 }
  0x2c   :  { %826 = vmatpush1.msra.mxu1 %v67_v0  ;;  %2788 = vmatmul.mubr.msk.f32.vlgmr.msra.gmra.mxu0 %vm251_vm0, %v3480_v16  ;;  %v95_v12 = vld [vmem:[%s5297_s1 + $0x210] sm:$0xff]  ;;  %v46_v13 = vld [vmem:[%s5297_s1 + $0x88] sm:$0xff]  ;;  %v72_v14 = vld [vmem:[%s5297_s1 + $0x158] sm:$0xff] }
  0x2d   :  { %827 = vmatprep.subr.mxu1 %v44_v1  ;;  %861 = vmatprep.mubr.f32.mxu1 %v3385_v17  ;;  %v45_v15 = vld [vmem:[%s5297_s1 + $0x80] sm:$0xff]  ;;  %v71_v18 = vld [vmem:[%s5297_s1 + $0x150] sm:$0xff]  ;;  %v48_v19 = vld [vmem:[%s5297_s1 + $0x98] sm:$0xff]  ;;  %p3371_p4 = pnand %p3370_p3, %p3364_p0 }
  0x2e   :  { %828 = vmatpush1.msra.mxu1 %v43_v2  ;;  %790 = vmatprep.mubr.f32.mxu0 %v3385_v17  ;;  %v47_v20 = vld [vmem:[%s5297_s1 + $0x90] sm:$0xff]  ;;  %v122_v21 = vld [vmem:[%s5297_s1 + $0x2e8] sm:$0xff]  ;;  %v121_v23 = vld [vmem:[%s5297_s1 + $0x2e0] sm:$0xff] }
  0x2f   :  { %2790 = vmatmul.mubr.msk.f32.vlgmr.msra.gmra.mxu1 %vm251_vm0, %v3480_v16  ;;  %898 = vmatprep.subr.mxu0 %v118_v3  ;;  %v124_v24 = vld [vmem:[%s5297_s1 + $0x2f8] sm:$0xff]  ;;  %v98_v25 = vld [vmem:[%s5297_s1 + $0x228] sm:$0xff]  ;;  %v123_v26 = vld [vmem:[%s5297_s1 + $0x2f0] sm:$0xff] }
  0x30   :  { %2789 = vmatmul.mubr.msk.f32.gmra.mxu0 %vm251_vm0, %v3504_v22  ;;  %867 = vmatprep.mubr.f32.mxu1 %v3385_v17  ;;  %v97_v27 = vld [vmem:[%s5297_s1 + $0x220] sm:$0xff]  ;;  %v74_v28 = vld [vmem:[%s5297_s1 + $0x168] sm:$0xff]  ;;  %v100_v29 = vld [vmem:[%s5297_s1 + $0x238] sm:$0xff] }
  0x31   :  { %899 = vmatpush1.msra.mxu0 %v117_v4  ;;  %975 = vmatprep.subr.mxu1 %v120_v5  ;;  %v73_v30 = vld [vmem:[%s5297_s1 + $0x160] sm:$0xff]  ;;  %v99_v31 = vld [vmem:[%s5297_s1 + $0x230] sm:$0xff]  ;;  %v50_v32 = vld [vmem:[%s5297_s1 + $0xa8] sm:$0xff] }
  0x32   :  { %900 = vmatprep.subr.mxu0 %v94_v6  ;;  %976 = vmatpush1.msra.mxu1 %v119_v7  ;;  %v76_v33 = vld [vmem:[%s5297_s1 + $0x178] sm:$0xff]  ;;  %v49_v34 = vld [vmem:[%s5297_s1 + $0xa0] sm:$0xff]  ;;  %v75_v35 = vld [vmem:[%s5297_s1 + $0x170] sm:$0xff] }
  0x33   :  { %2791 = vmatmul.mubr.msk.f32.gmra.mxu1 %vm251_vm0, %v3504_v22  ;;  %901 = vmatpush1.msra.mxu0 %v93_v8  ;;  %v52_v36 = vld [vmem:[%s5297_s1 + $0xb8] sm:$0xff]  ;;  %v51_v37 = vld [vmem:[%s5297_s1 + $0xb0] sm:$0xff]  ;;  %v1483_v45 = vld [vmem:[%s5299_s3 + $0x1e8] sm:$0xff] }
  0x34   :  { %902 = vmatprep.subr.mxu0 %v70_v9  ;;  %977 = vmatprep.subr.mxu1 %v96_v10  ;;  %v1453_v38 = vld [vmem:[%s5299_s3 + $0xf8] sm:$0xff]  ;;  %v1452_v42 = vld [vmem:[%s5299_s3 + $0xf0] sm:$0xff]  ;;  %v1435_v46 = vld [vmem:[%s5299_s3 + $0x68] sm:$0xff] }
  0x35   :  { %903 = vmatpush1.msra.mxu0 %v69_v11  ;;  %978 = vmatpush1.msra.mxu1 %v95_v12  ;;  %v1485_v39 = vld [vmem:[%s5299_s3 + $0x1f8] sm:$0xff]  ;;  %v1484_v43 = vld [vmem:[%s5299_s3 + $0x1f0] sm:$0xff]  ;;  %v1467_v47 = vld [vmem:[%s5299_s3 + $0x168] sm:$0xff] }
  0x36   :  { %904 = vmatprep.subr.mxu0 %v46_v13  ;;  %979 = vmatprep.subr.mxu1 %v72_v14  ;;  %v1437_v40 = vld [vmem:[%s5299_s3 + $0x78] sm:$0xff]  ;;  %v1468_v44 = vld [vmem:[%s5299_s3 + $0x170] sm:$0xff]  ;;  %v1450_v48 = vld [vmem:[%s5299_s3 + $0xe0] sm:$0xff] }
  0x37   :  { %905 = vmatpush1.msra.mxu0 %v45_v15  ;;  %938 = vmatprep.mubr.f32.mxu0 %v3385_v17  ;;  %v1469_v41 = vld [vmem:[%s5299_s3 + $0x178] sm:$0xff]  ;;  %v1482_v49 = vld [vmem:[%s5299_s3 + $0x1e0] sm:$0xff]  ;;  %v1448_v55 = vld [vmem:[%s5299_s3 + $0xd0] sm:$0xff] }
  0x38   :  { %980 = vmatpush1.msra.mxu1 %v71_v18  ;;  %2792 = vmatmul.mubr.msk.f32.vlgmr.msra.gmra.mxu0 %vm251_vm0, %v3480_v16  ;;  %v1466_v50 = vld [vmem:[%s5299_s3 + $0x160] sm:$0xff]  ;;  %v1449_v51 = vld [vmem:[%s5299_s3 + $0xd8] sm:$0xff]  ;;  %v1480_v56 = vld [vmem:[%s5299_s3 + $0x1d0] sm:$0xff] }
  0x39   :  { %981 = vmatprep.subr.mxu1 %v48_v19  ;;  %1015 = vmatprep.mubr.f32.mxu1 %v3385_v17  ;;  %v1481_v52 = vld [vmem:[%s5299_s3 + $0x1d8] sm:$0xff]  ;;  %v1432_v57 = vld [vmem:[%s5299_s3 + $0x50] sm:$0xff]  ;;  %v1447_v59 = vld [vmem:[%s5299_s3 + $0xc8] sm:$0xff] }
  0x3a   :  { %982 = vmatpush1.msra.mxu1 %v47_v20  ;;  %944 = vmatprep.mubr.f32.mxu0 %v3385_v17  ;;  %v1433_v53 = vld [vmem:[%s5299_s3 + $0x58] sm:$0xff]  ;;  %v1464_v58 = vld [vmem:[%s5299_s3 + $0x150] sm:$0xff]  ;;  %v1479_v60 = vld [vmem:[%s5299_s3 + $0x1c8] sm:$0xff] }
  0x3b   :  { %2794 = vmatmul.mubr.msk.f32.vlgmr.msra.gmra.mxu1 %vm251_vm0, %v3480_v16  ;;  %1052 = vmatprep.subr.mxu0 %v122_v21  ;;  %v1465_v54 = vld [vmem:[%s5299_s3 + $0x158] sm:$0xff]  ;;  %v1431_v61 = vld [vmem:[%s5299_s3 + $0x48] sm:$0xff]  ;;  %v1446_v63 = vld [vmem:[%s5299_s3 + $0xc0] sm:$0xff] }
  0x3c   :  { %2793 = vmatmul.mubr.msk.f32.gmra.mxu0 %vm251_vm0, %v3504_v22  ;;  %1021 = vmatprep.mubr.f32.mxu1 %v3385_v17  ;;  %v1463_v62 = vld [vmem:[%s5299_s3 + $0x148] sm:$0xff]  ;;  %v1478_v0 = vld [vmem:[%s5299_s3 + $0x1c0] sm:$0xff]  ;;  %v1445_v3 = vld [vmem:[%s5299_s3 + $0xb8] sm:$0xff] }
  0x3d   :  { %1053 = vmatpush1.msra.mxu0 %v121_v23  ;;  %1129 = vmatprep.subr.mxu1 %v124_v24  ;;  %v1430_v1 = vld [vmem:[%s5299_s3 + $0x40] sm:$0xff]  ;;  %v1477_v4 = vld [vmem:[%s5299_s3 + $0x1b8] sm:$0xff]  ;;  %v1444_v7 = vld [vmem:[%s5299_s3 + $0xb0] sm:$0xff] }
  0x3e   :  { %1054 = vmatprep.subr.mxu0 %v98_v25  ;;  %1130 = vmatpush1.msra.mxu1 %v123_v26  ;;  %v1462_v2 = vld [vmem:[%s5299_s3 + $0x140] sm:$0xff]  ;;  %v1429_v5 = vld [vmem:[%s5299_s3 + $0x38] sm:$0xff]  ;;  %v1476_v8 = vld [vmem:[%s5299_s3 + $0x1b0] sm:$0xff] }
  0x3f   :  { %2795 = vmatmul.mubr.msk.f32.gmra.mxu1 %vm251_vm0, %v3504_v22  ;;  %1055 = vmatpush1.msra.mxu0 %v97_v27  ;;  %v1461_v6 = vld [vmem:[%s5299_s3 + $0x138] sm:$0xff]  ;;  %v1428_v9 = vld [vmem:[%s5299_s3 + $0x30] sm:$0xff]  ;;  %v1443_v11 = vld [vmem:[%s5299_s3 + $0xa8] sm:$0xff] }
  0x40   :  { %1056 = vmatprep.subr.mxu0 %v74_v28  ;;  %1131 = vmatprep.subr.mxu1 %v100_v29  ;;  %v1460_v10 = vld [vmem:[%s5299_s3 + $0x130] sm:$0xff]  ;;  %v1475_v12 = vld [vmem:[%s5299_s3 + $0x1a8] sm:$0xff]  ;;  %v1442_v15 = vld [vmem:[%s5299_s3 + $0xa0] sm:$0xff] }
  0x41   :  { %1057 = vmatpush1.msra.mxu0 %v73_v30  ;;  %1132 = vmatpush1.msra.mxu1 %v99_v31  ;;  %v1427_v13 = vld [vmem:[%s5299_s3 + $0x28] sm:$0xff]  ;;  %v1474_v18 = vld [vmem:[%s5299_s3 + $0x1a0] sm:$0xff]  ;;  %v1441_v21 = vld [vmem:[%s5299_s3 + $0x98] sm:$0xff] }
  0x42   :  { %1058 = vmatprep.subr.mxu0 %v50_v32  ;;  %1133 = vmatprep.subr.mxu1 %v76_v33  ;;  %v1459_v14 = vld [vmem:[%s5299_s3 + $0x128] sm:$0xff]  ;;  %v1426_v19 = vld [vmem:[%s5299_s3 + $0x20] sm:$0xff]  ;;  %v1473_v23 = vld [vmem:[%s5299_s3 + $0x198] sm:$0xff] }
  0x43   :  { %1059 = vmatpush1.msra.mxu0 %v49_v34  ;;  %1092 = vmatprep.mubr.f32.mxu0 %v3385_v17  ;;  %v1458_v20 = vld [vmem:[%s5299_s3 + $0x120] sm:$0xff]  ;;  %v1425_v24 = vld [vmem:[%s5299_s3 + $0x18] sm:$0xff]  ;;  %v1440_v26 = vld [vmem:[%s5299_s3 + $0x90] sm:$0xff] }
  0x44   :  { %1134 = vmatpush1.msra.mxu1 %v75_v35  ;;  %2796 = vmatmul.mubr.msk.f32.vlgmr.msra.gmra.mxu0 %vm251_vm0, %v3480_v16  ;;  %v1457_v25 = vld [vmem:[%s5299_s3 + $0x118] sm:$0xff]  ;;  %v1472_v27 = vld [vmem:[%s5299_s3 + $0x190] sm:$0xff]  ;;  %v1439_v30 = vld [vmem:[%s5299_s3 + $0x88] sm:$0xff] }
  0x45   :  { %1135 = vmatprep.subr.mxu1 %v52_v36  ;;  %1169 = vmatprep.mubr.f32.mxu1 %v3385_v17  ;;  %v1424_v28 = vld [vmem:[%s5299_s3 + $0x10] sm:$0xff]  ;;  %v1471_v31 = vld [vmem:[%s5299_s3 + $0x188] sm:$0xff]  ;;  %v1438_v34 = vld [vmem:[%s5299_s3 + $0x80] sm:$0xff] }
  0x46   :  { %1136 = vmatpush1.msra.mxu1 %v51_v37  ;;  %1098 = vmatprep.mubr.f32.mxu0 %v3385_v17  ;;  %v1456_v29 = vld [vmem:[%s5299_s3 + $0x110] sm:$0xff]  ;;  %v1423_v32 = vld [vmem:[%s5299_s3 + $0x8] sm:$0xff]  ;;  %v1470_v35 = vld [vmem:[%s5299_s3 + $0x180] sm:$0xff] }
  0x47   :  { %2798 = vmatmul.mubr.msk.f32.vlgmr.msra.gmra.mxu1 %vm251_vm0, %v3480_v16  ;;  %2803 = vmatprep.subr.mxu0 %v1453_v38  ;;  %v1436_v16 = vld [vmem:[%s5299_s3 + $0x70] sm:$0xff]  ;;  %v1455_v33 = vld [vmem:[%s5299_s3 + $0x108] sm:$0xff]  ;;  %v1422_v36 = vld [vmem:[%s5299_s3] sm:$0xff] }
  0x48   :  { %2797 = vmatmul.mubr.msk.f32.gmra.mxu0 %vm251_vm0, %v3504_v22  ;;  %1175 = vmatprep.mubr.f32.mxu1 %v3385_v17  ;;  %v1451_v17 = vld [vmem:[%s5299_s3 + $0xe8] sm:$0xff]  ;;  %v1454_v37 = vld [vmem:[%s5299_s3 + $0x100] sm:$0xff]  ;;  %v1517_v38 = vld [vmem:[%s5299_s3 + $0x2f8] sm:$0xff] }
  0x49   :  { %2841 = vmatprep.subr.mxu1 %v1485_v39  ;;  %2804 = vmatpush3.msra.mxu0 %v1437_v40  ;;  %v1549_v39 = vld [vmem:[%s5299_s3 + $0x3f8] sm:$0xff]  ;;  %v131_v40 = vlaneseq }
  0x4a   :  { %2842 = vmatpush3.msra.mxu1 %v1469_v41  ;;  %2805 = vmatprep.subr.mxu0 %v1452_v42 }
  0x4b   :  { %2799 = vmatmul.mubr.msk.f32.gmra.mxu1 %vm251_vm0, %v3504_v22  ;;  %2843 = vmatprep.subr.mxu1 %v1484_v43  ;;  %v1434_v22 = vld [vmem:[%s5299_s3 + $0x60] sm:$0xff]  ;;  %v3997_v41 = vshrl.u32 %v131_v40, 7 }
  0x4c   :  { %2806 = vmatpush3.msra.mxu0 %v1436_v16  ;;  %2844 = vmatpush3.msra.mxu1 %v1468_v44  ;;  %v4008_v16 = vld [vmem:[%s5298_s2] sm:$0xff] }
  0x4d   :  { %2807 = vmatprep.subr.mxu0 %v1451_v17  ;;  %2845 = vmatprep.subr.mxu1 %v1483_v45  ;;  %v4000_v42 = vsub.s32 0, %v3997_v41  ;;  %v4003_v43 = vsub.s32 2, %v3997_v41  ;;  %v4011_v44 = vsub.s32 1, %v3997_v41  ;;  %v4014_v17 = vsub.s32 3, %v3997_v41 }
  0x4e   :  { %2808 = vmatpush3.msra.mxu0 %v1435_v46  ;;  %2846 = vmatpush3.msra.mxu1 %v1467_v47  ;;  %v4060_v40 = vsub.s32 6, %v3997_v41 }
  0x4f   :  { %2809 = vmatprep.subr.mxu0 %v1450_v48  ;;  %2847 = vmatprep.subr.mxu1 %v1482_v49  ;;  %v134_v45 = vrot.slane %v4008_v16, %v4000_v42  ;;  %v142_v46 = vrot.slane %v4008_v16, %v4003_v43  ;;  %v138_v49 = vrot.slane %v4008_v16, %v4011_v44 }
  0x50   :  { %2810 = vmatpush3.msra.mxu0 %v1434_v22  ;;  %2848 = vmatpush3.msra.mxu1 %v1466_v50  ;;  %v146_v22 = vrot.slane %v4008_v16, %v4014_v17 }
  0x51   :  { %2811 = vmatprep.subr.mxu0 %v1449_v51  ;;  %2849 = vmatprep.subr.mxu1 %v1481_v52 }
  0x52   :  { %2812 = vmatpush3.msra.mxu0 %v1433_v53  ;;  %2850 = vmatpush3.msra.mxu1 %v1465_v54 }
  0x53   :  { %2813 = vmatprep.subr.mxu0 %v1448_v55  ;;  %2851 = vmatprep.subr.mxu1 %v1480_v56 }
  0x54   :  { %2814 = vmatpush3.msra.mxu0 %v1432_v57  ;;  %2852 = vmatpush3.msra.mxu1 %v1464_v58 }
  0x55   :  { %2815 = vmatprep.subr.mxu0 %v1447_v59  ;;  %2853 = vmatprep.subr.mxu1 %v1479_v60 }
  0x56   :  { %2816 = vmatpush3.msra.mxu0 %v1431_v61  ;;  %2854 = vmatpush3.msra.mxu1 %v1463_v62  ;;  %v4027_v61 = vsub.s32 5, %v3997_v41 }
  0x57   :  { %2817 = vmatprep.subr.mxu0 %v1446_v63  ;;  %2855 = vmatprep.subr.mxu1 %v1478_v0 }
  0x58   :  { %2818 = vmatpush3.msra.mxu0 %v1430_v1  ;;  %2856 = vmatpush3.msra.mxu1 %v1462_v2 }
  0x59   :  { %2819 = vmatprep.subr.mxu0 %v1445_v3  ;;  %2857 = vmatprep.subr.mxu1 %v1477_v4 }
  0x5a   :  { %2820 = vmatpush3.msra.mxu0 %v1429_v5  ;;  %2858 = vmatpush3.msra.mxu1 %v1461_v6  ;;  %v4033_v6 = vsub.s32 7, %v3997_v41 }
  0x5b   :  { %2821 = vmatprep.subr.mxu0 %v1444_v7  ;;  %2859 = vmatprep.subr.mxu1 %v1476_v8  ;;  %v4037_v8 = vrot.slane %v4008_v16, %v4027_v61 }
  0x5c   :  { %2822 = vmatpush3.msra.mxu0 %v1428_v9  ;;  %2860 = vmatpush3.msra.mxu1 %v1460_v10 }
  0x5d   :  { %2823 = vmatprep.subr.mxu0 %v1443_v11  ;;  %2861 = vmatprep.subr.mxu1 %v1475_v12 }
  0x5e   :  { %2824 = vmatpush3.msra.mxu0 %v1427_v13  ;;  %2862 = vmatpush3.msra.mxu1 %v1459_v14  ;;  %v4044_v13 = vrot.slane %v4008_v16, %v4033_v6 }
  0x5f   :  { %2825 = vmatprep.subr.mxu0 %v1442_v15  ;;  %2863 = vmatprep.subr.mxu1 %v1474_v18 }
  0x60   :  { %2826 = vmatpush3.msra.mxu0 %v1426_v19  ;;  %2864 = vmatpush3.msra.mxu1 %v1458_v20 }
  0x61   :  { %2827 = vmatprep.subr.mxu0 %v1441_v21  ;;  %2865 = vmatprep.subr.mxu1 %v1473_v23 }
  0x62   :  { %2828 = vmatpush3.msra.mxu0 %v1425_v24  ;;  %2866 = vmatpush3.msra.mxu1 %v1457_v25 }
  0x63   :  { %2829 = vmatprep.subr.mxu0 %v1440_v26  ;;  %2867 = vmatprep.subr.mxu1 %v1472_v27 }
  0x64   :  { %2830 = vmatpush3.msra.mxu0 %v1424_v28  ;;  %2868 = vmatpush3.msra.mxu1 %v1456_v29 }
  0x65   :  { %2831 = vmatprep.subr.mxu0 %v1439_v30  ;;  %2869 = vmatprep.subr.mxu1 %v1471_v31 }
  0x66   :  { %2832 = vmatpush3.msra.mxu0 %v1423_v32  ;;  %2870 = vmatpush3.msra.mxu1 %v1455_v33 }
  0x67   :  { %2833 = vmatprep.subr.mxu0 %v1438_v34  ;;  %2871 = vmatprep.subr.mxu1 %v1470_v35 }
  0x68   :  { %2834 = vmatpush3.msra.mxu0 %v1422_v36  ;;  %2872 = vmatpush3.msra.mxu1 %v1454_v37  ;;  %v4057_v36 = vsub.s32 4, %v3997_v41  ;;  %v1548_v41 = vld [vmem:[%s5299_s3 + $0x3f0] sm:$0xff] }
  0x69   :  { %2879 = vmatprep.subr.mxu0 %v1517_v38  ;;  %2917 = vmatprep.subr.mxu1 %v1549_v39 }
  0xca   :  { %v324_v47 = vpop.f32.mrf.mxu0  ;;  %v401_v48 = vpop.f32.mrf.mxu1 }
  0xcb   :  { %v325_v50 = vadd.f32 %v324_v47, %v134_v45  ;;  %v402_v51 = vadd.f32 %v401_v48, %v142_v46 }
  0xcc   :  { %v326_v52 = vpop.f32.mrf.mxu0  ;;  %v403_v53 = vpop.f32.mrf.mxu1 }
  0xcd   :  { %v1230_v54 = vmul.f32 0.70710677, %v325_v50  ;;  %v1232_v55 = vmul.f32 0.70710677, %v402_v51  ;;  %v327_v56 = vadd.f32 %v326_v52, %v138_v49  ;;  %v404_v57 = vadd.f32 %v403_v53, %v146_v22  ;;  %v1500_v52 = vld [vmem:[%s5299_s3 + $0x270] sm:$0xff] }
  0xce   :  { %v330_v58 = vpop.f32.mrf.mxu0  ;;  %v407_v59 = vpop.f32.mrf.mxu1  ;;  %v1182_v31 = vmul.f32 0.5, %v325_v50  ;;  %v1184_v35 = vmul.f32 0.5, %v402_v51  ;;  %v1516_v50 = vld [vmem:[%s5299_s3 + $0x2f0] sm:$0xff] }
  0xcf   :  { %3263 = verf.f32 %v1230_v54  ;;  %v4024_v60 = vadd.f32 %v330_v58, %v134_v45  ;;  %v1231_v62 = vmul.f32 0.70710677, %v327_v56  ;;  %v1233_v1 = vmul.f32 0.70710677, %v404_v57  ;;  %v1515_v58 = vld [vmem:[%s5299_s3 + $0x2e8] sm:$0xff] }
  0xd0   :  { %3265 = verf.f32 %v1232_v55  ;;  %v332_v63 = vpop.f32.mrf.mxu0  ;;  %v409_v0 = vpop.f32.mrf.mxu1  ;;  %v4029_v3 = vadd.f32 %v407_v59, %v142_v46  ;;  %v1183_v29 = vmul.f32 0.5, %v327_v56  ;;  %v1185_v32 = vmul.f32 0.5, %v404_v57  ;;  %v1501_v46 = vld [vmem:[%s5299_s3 + $0x278] sm:$0xff]  ;;  %v1532_v57 = vld [vmem:[%s5299_s3 + $0x370] sm:$0xff] }
  0xd1   :  { %v333_v2 = vadd.f32 %v332_v63, %v138_v49  ;;  %3267 = verf.f32 %v1231_v62  ;;  %v1254_v4 = vmul.f32 0.70710677, %v4024_v60  ;;  %v410_v5 = vadd.f32 %v409_v0, %v146_v22  ;;  %v1533_v22 = vld [vmem:[%s5299_s3 + $0x378] sm:$0xff]  ;;  %v1499_v0 = vld [vmem:[%s5299_s3 + $0x268] sm:$0xff] }
  0xd2   :  { %3269 = verf.f32 %v1233_v1  ;;  %v1256_v11 = vmul.f32 0.70710677, %v4029_v3  ;;  %v1206_v55 = vmul.f32 0.5, %v4024_v60  ;;  %v150_v56 = vrot.slane %v4008_v16, %v4057_v36  ;;  %v1547_v60 = vld [vmem:[%s5299_s3 + $0x3e8] sm:$0xff] }
  0xd3   :  { %v1255_v7 = vmul.f32 0.70710677, %v333_v2  ;;  %v1257_v9 = vmul.f32 0.70710677, %v410_v5  ;;  %v1207_v49 = vmul.f32 0.5, %v333_v2  ;;  %v1209_v62 = vmul.f32 0.5, %v410_v5 }
  0xd4   :  { %v4039_v10 = vpop.f32.mrf.mxu0  ;;  %v158_v63 = vrot.slane %v4008_v16, %v4060_v40  ;;  %v1531_v2 = vld [vmem:[%s5299_s3 + $0x368] sm:$0xff]  ;;  %v1514_v16 = vld [vmem:[%s5299_s3 + $0x2e0] sm:$0xff] }
  0xd5   :  { %3271 = verf.f32 %v1255_v7  ;;  %v1208_v7 = vmul.f32 0.5, %v4029_v3  ;;  %v1530_v3 = vld [vmem:[%s5299_s3 + $0x360] sm:$0xff] }
  0xd6   :  { %3273 = verf.f32 %v1254_v4  ;;  %v480_v12 = vpop.f32.mrf.mxu0 }
  0xd7   :  { %3275 = verf.f32 %v1257_v9  ;;  %v4047_v14 = vadd.f32 %v480_v12, %v4037_v8  ;;  %v4049_v15 = vpop.f32.mrf.mxu1  ;;  %v1546_v9 = vld [vmem:[%s5299_s3 + $0x3e0] sm:$0xff] }
  0xd8   :  { %3277 = verf.f32 %v1256_v11  ;;  %v484_v53 = vpop.f32.mrf.mxu0 }
  0xd9   :  { %v557_v18 = vpop.f32.mrf.mxu1  ;;  %v1235_v19 = vmul.f32 0.70710677, %v4047_v14 }
  0xda   :  { %v4053_v20 = vadd.f32 %v557_v18, %v4044_v13  ;;  %v486_v12 = vpop.f32.mrf.mxu0  ;;  %v4105_v18 = vadd.f32 %v4039_v10, %v150_v56  ;;  %v1513_v10 = vld [vmem:[%s5299_s3 + $0x2d8] sm:$0xff] }
  0xdb   :  { %3279 = verf.f32 %v1235_v19  ;;  %v561_v5 = vpop.f32.mrf.mxu1  ;;  %v1498_v19 = vld [vmem:[%s5299_s3 + $0x260] sm:$0xff] }
  0xdc   :  { %v3264_v21 = vpop.eup %3263  ;;  %v1237_v24 = vmul.f32 0.70710677, %v4053_v20 }
  0xdd   :  { %v3266_v23 = vpop.eup %3265  ;;  %v1326_v26 = vadd.f32 1.0, %v3264_v21 }
  0xde   :  { %v3268_v25 = vpop.eup %3267  ;;  %v1328_v28 = vadd.f32 1.0, %v3266_v23  ;;  %3281 = verf.f32 %v1237_v24  ;;  %v4114_v24 = vadd.f32 %v4049_v15, %v158_v63  ;;  %v1497_v15 = vld [vmem:[%s5299_s3 + $0x258] sm:$0xff] }
  0xdf   :  { %v3270_v27 = vpop.eup %3269  ;;  %v1327_v30 = vadd.f32 1.0, %v3268_v25  ;;  %v1374_v39 = vmul.f32 %v1326_v26, %v1182_v31  ;;  %v1545_v26 = vld [vmem:[%s5299_s3 + $0x3d8] sm:$0xff] }
  0xe0   :  { %v1329_v33 = vadd.f32 1.0, %v3270_v27  ;;  %v1376_v48 = vmul.f32 %v1328_v28, %v1184_v35  ;;  %v4123_v27 = vadd.f32 %v486_v12, %v4037_v8  ;;  %v563_v28 = vpop.f32.mrf.mxu1  ;;  %v4133_v8 = vadd.f32 %v484_v53, %v150_v56  ;;  %v4180_v56 = vpop.f32.mrf.mxu0  ;;  %v1507_v12 = vld [vmem:[%s5299_s3 + $0x2a8] sm:$0xff] }
  0xe1   :  { %v1375_v37 = vmul.f32 %v1327_v30, %v1183_v29  ;;  %v1529_v29 = vld [vmem:[%s5299_s3 + $0x358] sm:$0xff] }
  0xe2   :  { %v3272_v34 = vpop.eup %3271  ;;  %v1377_v45 = vmul.f32 %v1329_v33, %v1185_v32  ;;  %v1234_v32 = vmul.f32 0.70710677, %v4105_v18  ;;  %v1187_v33 = vmul.f32 0.5, %v4047_v14  ;;  %v1496_v14 = vld [vmem:[%s5299_s3 + $0x250] sm:$0xff] }
  0xe3   :  { %v3274_v38 = vpop.eup %3273  ;;  %1877 = vmatprep.mubr.f32.mxu0 %v1375_v37  ;;  %v1351_v51 = vadd.f32 1.0, %v3272_v34  ;;  %v1512_v34 = vld [vmem:[%s5299_s3 + $0x2d0] sm:$0xff]  ;;  %v1236_v37 = vmul.f32 0.70710677, %v4114_v24 }
  0xe4   :  { %v3276_v47 = vpop.eup %3275  ;;  %1952 = vmatprep.mubr.f32.mxu1 %v1377_v45  ;;  %1878 = vmatmul.mubr.f32.vlgmr.msra.gmra.mxu0 %v1374_v39  ;;  %v1350_v59 = vadd.f32 1.0, %v3274_v38  ;;  %v1544_v38 = vld [vmem:[%s5299_s3 + $0x3d0] sm:$0xff]  ;;  %v4146_v39 = vadd.f32 %v563_v28, %v4044_v13  ;;  %v1543_v13 = vld [vmem:[%s5299_s3 + $0x3c8] sm:$0xff]  ;;  %3283 = verf.f32 %v1234_v32  ;;  %v1538_v28 = vld [vmem:[%s5299_s3 + $0x3a0] sm:$0xff] }
  0xe5   :  { %v3278_v54 = vpop.eup %3277  ;;  %1953 = vmatmul.mubr.f32.vlgmr.msra.gmra.mxu1 %v1376_v48  ;;  %2880 = vmatpush3.msra.mxu0 %v1501_v46  ;;  %v1353_v1 = vadd.f32 1.0, %v3276_v47  ;;  %v1399_v4 = vmul.f32 %v1351_v51, %v1207_v49  ;;  %v1528_v45 = vld [vmem:[%s5299_s3 + $0x350] sm:$0xff]  ;;  %v1259_v46 = vmul.f32 0.70710677, %v4123_v27  ;;  %v1511_v47 = vld [vmem:[%s5299_s3 + $0x2c8] sm:$0xff]  ;;  %v1189_v48 = vmul.f32 0.5, %v4053_v20 }
  0xe6   :  { %2918 = vmatpush3.msra.mxu1 %v1533_v22  ;;  %2881 = vmatprep.subr.mxu0 %v1516_v50  ;;  %v1352_v11 = vadd.f32 1.0, %v3278_v54  ;;  %v1398_v21 = vmul.f32 %v1350_v59, %v1206_v55  ;;  %v4156_v49 = vadd.f32 %v561_v5, %v158_v63  ;;  %v1495_v22 = vld [vmem:[%s5299_s3 + $0x248] sm:$0xff]  ;;  %v1258_v51 = vmul.f32 0.70710677, %v4133_v8  ;;  %v1542_v54 = vld [vmem:[%s5299_s3 + $0x3c0] sm:$0xff]  ;;  %v1541_v63 = vld [vmem:[%s5299_s3 + $0x3b8] sm:$0xff]  ;;  %v634_v5 = vpop.f32.mrf.mxu0 }
  0xe7   :  { %2919 = vmatprep.subr.mxu1 %v1548_v41  ;;  %2882 = vmatpush3.msra.mxu0 %v1500_v52  ;;  %v1401_v25 = vmul.f32 %v1353_v1, %v1209_v62  ;;  %v1527_v20 = vld [vmem:[%s5299_s3 + $0x348] sm:$0xff]  ;;  %v1510_v41 = vld [vmem:[%s5299_s3 + $0x2c0] sm:$0xff]  ;;  %3285 = verf.f32 %v1236_v37  ;;  %v1261_v53 = vmul.f32 0.70710677, %v4146_v39  ;;  %v1509_v62 = vld [vmem:[%s5299_s3 + $0x2b8] sm:$0xff] }
  0xe8   :  { %2920 = vmatpush3.msra.mxu1 %v1532_v57  ;;  %2883 = vmatprep.subr.mxu0 %v1515_v58  ;;  %v3280_v23 = vpop.eup %3279  ;;  %v1400_v30 = vmul.f32 %v1352_v11, %v1208_v7  ;;  %v4178_v55 = vld [vmem:[%s5298_s2 + $0x8] sm:$0xff]  ;;  %3287 = verf.f32 %v1259_v46  ;;  %v1494_v57 = vld [vmem:[%s5299_s3 + $0x240] sm:$0xff]  ;;  %v1260_v59 = vmul.f32 0.70710677, %v4156_v49  ;;  %v1540_v7 = vld [vmem:[%s5299_s3 + $0x3b0] sm:$0xff] }
  0xe9   :  { %2921 = vmatprep.subr.mxu1 %v1547_v60  ;;  %2884 = vmatpush3.msra.mxu0 %v1499_v0  ;;  %v1331_v35 = vadd.f32 1.0, %v3280_v23  ;;  %v1526_v58 = vld [vmem:[%s5299_s3 + $0x340] sm:$0xff]  ;;  %3289 = verf.f32 %v1258_v51  ;;  %v1493_v0 = vld [vmem:[%s5299_s3 + $0x238] sm:$0xff]  ;;  %v4200_v1 = vrot.slane %v4178_v55, %v4011_v44  ;;  %v1524_v11 = vld [vmem:[%s5299_s3 + $0x330] sm:$0xff] }
  0xea   :  { %2922 = vmatpush3.msra.mxu1 %v1531_v2  ;;  %2885 = vmatprep.subr.mxu0 %v1514_v16  ;;  %v4202_v2 = vpop.f32.mrf.mxu1  ;;  %3291 = verf.f32 %v1261_v53  ;;  %v1525_v16 = vld [vmem:[%s5299_s3 + $0x338] sm:$0xff]  ;;  %v1488_v46 = vld [vmem:[%s5299_s3 + $0x210] sm:$0xff]  ;;  %v1188_v53 = vmul.f32 0.5, %v4114_v24  ;;  %v1534_v24 = vld [vmem:[%s5299_s3 + $0x380] sm:$0xff] }
  0xeb   :  { %2923 = vmatprep.subr.mxu1 %v1546_v9  ;;  %1882 = vmatprep.mubr.f32.mxu0 %v1399_v4  ;;  %v3282_v31 = vpop.eup %3281  ;;  %v1379_v52 = vmul.f32 %v1331_v35, %v1187_v33  ;;  %v1508_v4 = vld [vmem:[%s5299_s3 + $0x2b0] sm:$0xff]  ;;  %3293 = verf.f32 %v1260_v59  ;;  %v4233_v23 = vadd.f32 %v634_v5, %v4200_v1  ;;  %v1537_v33 = vld [vmem:[%s5299_s3 + $0x398] sm:$0xff]  ;;  %v1211_v59 = vmul.f32 0.5, %v4123_v27 }
  0xec   :  { %2886 = vmatpush3.msra.mxu0 %v1498_v19  ;;  %2924 = vmatpush3.msra.mxu1 %v1530_v3  ;;  %v1333_v50 = vadd.f32 1.0, %v3282_v31  ;;  %v1492_v9 = vld [vmem:[%s5299_s3 + $0x230] sm:$0xff]  ;;  %v4224_v19 = vrot.slane %v4178_v55, %v4014_v17  ;;  %v1539_v3 = vld [vmem:[%s5299_s3 + $0x3a8] sm:$0xff]  ;;  %v1521_v37 = vld [vmem:[%s5299_s3 + $0x318] sm:$0xff] }
  0xed   :  { %1883 = vmatmul.mubr.f32.gmra.mxu0 %v1398_v21  ;;  %2887 = vmatprep.subr.mxu0 %v1513_v10  ;;  %v1491_v21 = vld [vmem:[%s5299_s3 + $0x228] sm:$0xff]  ;;  %v711_v10 = vpop.f32.mrf.mxu1  ;;  %v1239_v32 = vmul.f32 0.70710677, %v4233_v23 }
  0xee   :  { %2925 = vmatprep.subr.mxu1 %v1545_v26  ;;  %1957 = vmatprep.mubr.f32.mxu1 %v1401_v25  ;;  %v1381_v60 = vmul.f32 %v1333_v50, %v1189_v48  ;;  %v1523_v25 = vld [vmem:[%s5299_s3 + $0x328] sm:$0xff]  ;;  %v1506_v26 = vld [vmem:[%s5299_s3 + $0x2a0] sm:$0xff]  ;;  %v4254_v31 = vadd.f32 %v711_v10, %v4224_v19  ;;  %v1186_v50 = vmul.f32 0.5, %v4105_v18  ;;  %v1212_v10 = vmul.f32 0.5, %v4156_v49  ;;  %v1596_v49 = vld [vmem:[%s5299_s3 + $0x570] sm:$0xff] }
  0xef   :  { %2888 = vmatpush3.msra.mxu0 %v1497_v15  ;;  %2926 = vmatpush3.msra.mxu1 %v1529_v29  ;;  %v1490_v15 = vld [vmem:[%s5299_s3 + $0x220] sm:$0xff]  ;;  %3295 = verf.f32 %v1239_v32  ;;  %v1519_v18 = vld [vmem:[%s5299_s3 + $0x308] sm:$0xff]  ;;  %v174_v32 = vrot.slane %v4178_v55, %v4003_v43 }
  0xf0   :  { %1958 = vmatmul.mubr.f32.gmra.mxu1 %v1400_v30  ;;  %2889 = vmatprep.subr.mxu0 %v1512_v34  ;;  %v1522_v29 = vld [vmem:[%s5299_s3 + $0x320] sm:$0xff]  ;;  %v1505_v30 = vld [vmem:[%s5299_s3 + $0x298] sm:$0xff]  ;;  %v1241_v48 = vmul.f32 0.70710677, %v4254_v31 }
  0xf1   :  { %2927 = vmatprep.subr.mxu1 %v1544_v38  ;;  %2890 = vmatpush3.msra.mxu0 %v1496_v14  ;;  %v1489_v34 = vld [vmem:[%s5299_s3 + $0x218] sm:$0xff]  ;;  %v3284_v35 = vpop.eup %3283  ;;  %v1504_v38 = vld [vmem:[%s5299_s3 + $0x290] sm:$0xff] }
  0xf2   :  { %2928 = vmatpush3.msra.mxu1 %v1528_v45  ;;  %2891 = vmatprep.subr.mxu0 %v1511_v47  ;;  %v1536_v45 = vld [vmem:[%s5299_s3 + $0x390] sm:$0xff]  ;;  %v1330_v51 = vadd.f32 1.0, %v3284_v35  ;;  %3297 = verf.f32 %v1241_v48  ;;  %v1611_v35 = vld [vmem:[%s5299_s3 + $0x5e8] sm:$0xff]  ;;  %v1578_v48 = vld [vmem:[%s5299_s3 + $0x4e0] sm:$0xff] }
  0xf3   :  { %2929 = vmatprep.subr.mxu1 %v1543_v13  ;;  %2892 = vmatpush3.msra.mxu0 %v1495_v22  ;;  %v1520_v13 = vld [vmem:[%s5299_s3 + $0x310] sm:$0xff]  ;;  %v1503_v22 = vld [vmem:[%s5299_s3 + $0x288] sm:$0xff] }
  0xf4   :  { %2930 = vmatpush3.msra.mxu1 %v1527_v20  ;;  %2893 = vmatprep.subr.mxu0 %v1510_v41  ;;  %v3286_v14 = vpop.eup %3285  ;;  %v1535_v20 = vld [vmem:[%s5299_s3 + $0x388] sm:$0xff]  ;;  %v1378_v27 = vmul.f32 %v1330_v51, %v1186_v50  ;;  %v1610_v50 = vld [vmem:[%s5299_s3 + $0x5e0] sm:$0xff] }
  0xf5   :  { %2027 = vmatprep.mubr.f32.mxu0 %v1379_v52  ;;  %2931 = vmatprep.subr.mxu1 %v1542_v54  ;;  %v3288_v47 = vpop.eup %3287  ;;  %v1487_v41 = vld [vmem:[%s5299_s3 + $0x208] sm:$0xff]  ;;  %v1332_v54 = vadd.f32 1.0, %v3286_v14  ;;  %v1594_v51 = vld [vmem:[%s5299_s3 + $0x560] sm:$0xff] }
  0xf6   :  { %2894 = vmatpush3.msra.mxu0 %v1494_v57  ;;  %2932 = vmatpush3.msra.mxu1 %v1526_v58  ;;  %v3290_v52 = vpop.eup %3289  ;;  %v1502_v57 = vld [vmem:[%s5299_s3 + $0x280] sm:$0xff]  ;;  %v1595_v14 = vld [vmem:[%s5299_s3 + $0x568] sm:$0xff] }
  0xf7   :  { %2895 = vmatprep.subr.mxu0 %v1509_v62  ;;  %2933 = vmatprep.subr.mxu1 %v1541_v63  ;;  %v3292_v58 = vpop.eup %3291  ;;  %v1486_v62 = vld [vmem:[%s5299_s3 + $0x200] sm:$0xff]  ;;  %v1355_v63 = vadd.f32 1.0, %v3288_v47  ;;  %v1354_v5 = vadd.f32 1.0, %v3290_v52  ;;  %v1609_v52 = vld [vmem:[%s5299_s3 + $0x5d8] sm:$0xff] }
  0xf8   :  { %2102 = vmatprep.mubr.f32.mxu1 %v1381_v60  ;;  %2896 = vmatpush3.msra.mxu0 %v1493_v0  ;;  %v1518_v60 = vld [vmem:[%s5299_s3 + $0x300] sm:$0xff]  ;;  %v3294_v0 = vpop.eup %3293 }
  0xf9   :  { %2934 = vmatpush3.msra.mxu1 %v1525_v16  ;;  %2897 = vmatprep.subr.mxu0 %v1508_v4  ;;  %v1210_v16 = vmul.f32 0.5, %v4133_v8  ;;  %v1581_v4 = vld [vmem:[%s5299_s3 + $0x4f8] sm:$0xff] }
  0xfa   :  { %2935 = vmatprep.subr.mxu1 %v1540_v7  ;;  %2898 = vmatpush3.msra.mxu0 %v1492_v9  ;;  %v1380_v7 = vmul.f32 %v1332_v54, %v1188_v53  ;;  %v1213_v9 = vmul.f32 0.5, %v4146_v39  ;;  %v1565_v8 = vld [vmem:[%s5299_s3 + $0x478] sm:$0xff]  ;;  %v1580_v39 = vld [vmem:[%s5299_s3 + $0x4f0] sm:$0xff] }
  0xfb   :  { %2936 = vmatpush3.msra.mxu1 %v1524_v11  ;;  %2899 = vmatprep.subr.mxu0 %v1507_v12  ;;  %v1613_v11 = vld [vmem:[%s5299_s3 + $0x5f8] sm:$0xff]  ;;  %v1357_v12 = vadd.f32 1.0, %v3292_v58 }
  0xfc   :  { %2937 = vmatprep.subr.mxu1 %v1539_v3  ;;  %2900 = vmatpush3.msra.mxu0 %v1491_v21  ;;  %v1597_v3 = vld [vmem:[%s5299_s3 + $0x578] sm:$0xff]  ;;  %v1403_v21 = vmul.f32 %v1355_v63, %v1211_v59  ;;  %v1576_v59 = vld [vmem:[%s5299_s3 + $0x4d0] sm:$0xff] }
  0xfd   :  { %2938 = vmatpush3.msra.mxu1 %v1523_v25  ;;  %2901 = vmatprep.subr.mxu0 %v1506_v26  ;;  %v1612_v25 = vld [vmem:[%s5299_s3 + $0x5f0] sm:$0xff]  ;;  %v1356_v26 = vadd.f32 1.0, %v3294_v0  ;;  %v1561_v53 = vld [vmem:[%s5299_s3 + $0x458] sm:$0xff] }
  0xfe   :  { %2939 = vmatprep.subr.mxu1 %v1538_v28  ;;  %2902 = vmatpush3.msra.mxu0 %v1490_v15  ;;  %v638_v28 = vpop.f32.mrf.mxu0  ;;  %v166_v15 = vrot.slane %v4178_v55, %v4000_v42  ;;  %v1560_v63 = vld [vmem:[%s5299_s3 + $0x450] sm:$0xff] }
  0xff   :  { %2940 = vmatpush3.msra.mxu1 %v1522_v29  ;;  %2903 = vmatprep.subr.mxu0 %v1505_v30  ;;  %v1564_v29 = vld [vmem:[%s5299_s3 + $0x470] sm:$0xff]  ;;  %v1402_v30 = vmul.f32 %v1354_v5, %v1210_v16  ;;  %v1575_v16 = vld [vmem:[%s5299_s3 + $0x4c8] sm:$0xff] }
 0x100   :  { %2941 = vmatprep.subr.mxu1 %v1537_v33  ;;  %2904 = vmatpush3.msra.mxu0 %v1489_v34  ;;  %v1579_v33 = vld [vmem:[%s5299_s3 + $0x4e8] sm:$0xff]  ;;  %v1405_v34 = vmul.f32 %v1357_v12, %v1213_v9  ;;  %v4350_v47 = vadd.f32 %v4180_v56, %v166_v15  ;;  %v1562_v56 = vld [vmem:[%s5299_s3 + $0x460] sm:$0xff]  ;;  %v4384_v58 = vadd.f32 %v638_v28, %v166_v15  ;;  %v1592_v0 = vld [vmem:[%s5299_s3 + $0x550] sm:$0xff] }
 0x101   :  { %2942 = vmatpush3.msra.mxu1 %v1521_v37  ;;  %2905 = vmatprep.subr.mxu0 %v1504_v38  ;;  %v715_v37 = vpop.f32.mrf.mxu1  ;;  %v1563_v38 = vld [vmem:[%s5299_s3 + $0x468] sm:$0xff]  ;;  %v1573_v28 = vld [vmem:[%s5299_s3 + $0x4b8] sm:$0xff] }
 0x102   :  { %2943 = vmatprep.subr.mxu1 %v1536_v45  ;;  %2906 = vmatpush3.msra.mxu0 %v1488_v46  ;;  %v1404_v45 = vmul.f32 %v1356_v26, %v1212_v10  ;;  %v640_v46 = vpop.f32.mrf.mxu0  ;;  %v4407_v5 = vadd.f32 %v715_v37, %v174_v32  ;;  %v1558_v10 = vld [vmem:[%s5299_s3 + $0x440] sm:$0xff]  ;;  %v1605_v15 = vld [vmem:[%s5299_s3 + $0x5b8] sm:$0xff]  ;;  %v1604_v37 = vld [vmem:[%s5299_s3 + $0x5b0] sm:$0xff] }
 0x103   :  { %2944 = vmatpush3.msra.mxu1 %v1520_v13  ;;  %2907 = vmatprep.subr.mxu0 %v1503_v22  ;;  %v3296_v13 = vpop.eup %3295  ;;  %v4356_v22 = vadd.f32 %v4202_v2, %v174_v32  ;;  %v1577_v2 = vld [vmem:[%s5299_s3 + $0x4d8] sm:$0xff] }
 0x104   :  { %2945 = vmatprep.subr.mxu1 %v1535_v20  ;;  %2908 = vmatpush3.msra.mxu0 %v1487_v41  ;;  %v4371_v20 = vadd.f32 %v640_v46, %v4200_v1  ;;  %v717_v41 = vpop.f32.mrf.mxu1  ;;  %v3298_v54 = vpop.eup %3297  ;;  %v1593_v1 = vld [vmem:[%s5299_s3 + $0x558] sm:$0xff]  ;;  %v1264_v26 = vmul.f32 0.70710677, %v4407_v5  ;;  %v4470_v46 = vrot.slane %v4178_v55, %v4033_v6 }
 0x105   :  { %2946 = vmatpush3.msra.mxu1 %v1519_v18  ;;  %2909 = vmatprep.subr.mxu0 %v1502_v57  ;;  %v1238_v18 = vmul.f32 0.70710677, %v4350_v47  ;;  %v1191_v57 = vmul.f32 0.5, %v4233_v23  ;;  %v1608_v23 = vld [vmem:[%s5299_s3 + $0x5d0] sm:$0xff]  ;;  %v1337_v9 = vadd.f32 1.0, %v3298_v54  ;;  %v1569_v54 = vld [vmem:[%s5299_s3 + $0x498] sm:$0xff] }
 0x106   :  { %2947 = vmatprep.subr.mxu1 %v1534_v24  ;;  %2910 = vmatpush3.msra.mxu0 %v1486_v62  ;;  %v1335_v24 = vadd.f32 1.0, %v3296_v13  ;;  %v1240_v62 = vmul.f32 0.70710677, %v4356_v22  ;;  %v4448_v32 = vpop.f32.mrf.mxu1  ;;  %v1555_v13 = vld [vmem:[%s5299_s3 + $0x428] sm:$0xff] }
 0x107   :  { %2948 = vmatpush3.msra.mxu1 %v1518_v60  ;;  %2028 = vmatmul.mubr.f32.vlgmr.msra.gmra.mxu0 %v1378_v27  ;;  %v4397_v60 = vadd.f32 %v717_v41, %v4224_v19  ;;  %v1263_v27 = vmul.f32 0.70710677, %v4371_v20  ;;  %v1607_v19 = vld [vmem:[%s5299_s3 + $0x5c8] sm:$0xff]  ;;  %3299 = verf.f32 %v1238_v18  ;;  %v1602_v41 = vld [vmem:[%s5299_s3 + $0x5a0] sm:$0xff] }
 0x108   :  { %2103 = vmatmul.mubr.f32.vlgmr.msra.gmra.mxu1 %v1380_v7  ;;  %2955 = vmatprep.subr.mxu0 %v1581_v4  ;;  %v1193_v4 = vmul.f32 0.5, %v4254_v31  ;;  %v1559_v7 = vld [vmem:[%s5299_s3 + $0x448] sm:$0xff]  ;;  %v1383_v12 = vmul.f32 %v1335_v24, %v1191_v57  ;;  %3301 = verf.f32 %v1240_v62  ;;  %v1585_v62 = vld [vmem:[%s5299_s3 + $0x518] sm:$0xff] }
 0x109   :  { %2993 = vmatprep.subr.mxu1 %v1613_v11  ;;  %2956 = vmatpush3.msra.mxu0 %v1565_v8  ;;  %v1262_v11 = vmul.f32 0.70710677, %v4384_v58  ;;  %v1591_v31 = vld [vmem:[%s5299_s3 + $0x548] sm:$0xff]  ;;  %v1574_v8 = vld [vmem:[%s5299_s3 + $0x4c0] sm:$0xff]  ;;  %3303 = verf.f32 %v1263_v27  ;;  %v1552_v27 = vld [vmem:[%s5299_s3 + $0x410] sm:$0xff] }
 0x10a   :  { %2994 = vmatpush3.msra.mxu1 %v1597_v3  ;;  %2957 = vmatprep.subr.mxu0 %v1580_v39  ;;  %v1265_v3 = vmul.f32 0.70710677, %v4397_v60  ;;  %v1606_v39 = vld [vmem:[%s5299_s3 + $0x5c0] sm:$0xff] }
 0x10b   :  { %2995 = vmatprep.subr.mxu1 %v1612_v25  ;;  %2032 = vmatprep.mubr.f32.mxu0 %v1403_v21  ;;  %v4426_v21 = vpop.f32.mrf.mxu0  ;;  %v1590_v25 = vld [vmem:[%s5299_s3 + $0x540] sm:$0xff]  ;;  %3305 = verf.f32 %v1262_v11 }
 0x10c   :  { %2958 = vmatpush3.msra.mxu0 %v1564_v29  ;;  %2996 = vmatpush3.msra.mxu1 %v1596_v49  ;;  %v1385_v29 = vmul.f32 %v1337_v9, %v1193_v4  ;;  %v1557_v49 = vld [vmem:[%s5299_s3 + $0x438] sm:$0xff]  ;;  %3307 = verf.f32 %v1265_v3  ;;  %v1190_v9 = vmul.f32 0.5, %v4350_v47  ;;  %v1192_v3 = vmul.f32 0.5, %v4356_v22  ;;  %v1583_v47 = vld [vmem:[%s5299_s3 + $0x508] sm:$0xff]  ;;  %v1598_v22 = vld [vmem:[%s5299_s3 + $0x580] sm:$0xff] }
 0x10d   :  { %2033 = vmatmul.mubr.f32.gmra.mxu0 %v1402_v30  ;;  %2959 = vmatprep.subr.mxu0 %v1579_v33  ;;  %v4446_v30 = vrot.slane %v4178_v55, %v4027_v61  ;;  %v1589_v33 = vld [vmem:[%s5299_s3 + $0x538] sm:$0xff]  ;;  %3309 = verf.f32 %v1264_v26  ;;  %v1215_v26 = vmul.f32 0.5, %v4371_v20 }
 0x10e   :  { %2997 = vmatprep.subr.mxu1 %v1611_v35  ;;  %2107 = vmatprep.mubr.f32.mxu1 %v1405_v34  ;;  %v1572_v34 = vld [vmem:[%s5299_s3 + $0x4b0] sm:$0xff]  ;;  %v788_v35 = vpop.f32.mrf.mxu0 }
 0x10f   :  { %2960 = vmatpush3.msra.mxu0 %v1563_v38  ;;  %2998 = vmatpush3.msra.mxu1 %v1595_v14  ;;  %v1556_v38 = vld [vmem:[%s5299_s3 + $0x430] sm:$0xff] }
 0x110   :  { %2108 = vmatmul.mubr.f32.gmra.mxu1 %v1404_v45  ;;  %2961 = vmatprep.subr.mxu0 %v1578_v48  ;;  %v1588_v14 = vld [vmem:[%s5299_s3 + $0x530] sm:$0xff]  ;;  %v1571_v45 = vld [vmem:[%s5299_s3 + $0x4a8] sm:$0xff] }
 0x111   :  { %2999 = vmatprep.subr.mxu1 %v1610_v50  ;;  %2962 = vmatpush3.msra.mxu0 %v1562_v56  ;;  %v1603_v48 = vld [vmem:[%s5299_s3 + $0x5a8] sm:$0xff]  ;;  %v4479_v50 = vadd.f32 %v788_v35, %v4446_v30  ;;  %v865_v56 = vpop.f32.mrf.mxu1 }
 0x112   :  { %3000 = vmatpush3.msra.mxu1 %v1594_v51  ;;  %2963 = vmatprep.subr.mxu0 %v1577_v2  ;;  %v1587_v51 = vld [vmem:[%s5299_s3 + $0x528] sm:$0xff]  ;;  %v1570_v2 = vld [vmem:[%s5299_s3 + $0x4a0] sm:$0xff]  ;;  %v4500_v18 = vadd.f32 %v865_v56, %v4470_v46  ;;  %v1216_v56 = vmul.f32 0.5, %v4407_v5  ;;  %v1660_v5 = vld [vmem:[%s5299_s3 + $0x770] sm:$0xff] }
 0x113   :  { %3001 = vmatprep.subr.mxu1 %v1609_v52  ;;  %2964 = vmatpush3.msra.mxu0 %v1561_v53  ;;  %v1554_v52 = vld [vmem:[%s5299_s3 + $0x420] sm:$0xff]  ;;  %v1243_v57 = vmul.f32 0.70710677, %v4479_v50 }
 0x114   :  { %3002 = vmatpush3.msra.mxu1 %v1593_v1  ;;  %2965 = vmatprep.subr.mxu0 %v1576_v59  ;;  %v1586_v53 = vld [vmem:[%s5299_s3 + $0x520] sm:$0xff]  ;;  %v1601_v1 = vld [vmem:[%s5299_s3 + $0x598] sm:$0xff]  ;;  %v3300_v24 = vpop.eup %3299  ;;  %v1245_v4 = vmul.f32 0.70710677, %v4500_v18 }
 0x115   :  { %3003 = vmatprep.subr.mxu1 %v1608_v23  ;;  %2966 = vmatpush3.msra.mxu0 %v1560_v63  ;;  %v1553_v59 = vld [vmem:[%s5299_s3 + $0x418] sm:$0xff]  ;;  %v1568_v23 = vld [vmem:[%s5299_s3 + $0x490] sm:$0xff]  ;;  %v3302_v63 = vpop.eup %3301  ;;  %v1334_v11 = vadd.f32 1.0, %v3300_v24  ;;  %3311 = verf.f32 %v1243_v57  ;;  %v190_v57 = vrot.slane %v4178_v55, %v4060_v40  ;;  %v1675_v24 = vld [vmem:[%s5299_s3 + $0x7e8] sm:$0xff] }
 0x116   :  { %3004 = vmatpush3.msra.mxu1 %v1592_v0  ;;  %2967 = vmatprep.subr.mxu0 %v1575_v16  ;;  %v1600_v0 = vld [vmem:[%s5299_s3 + $0x590] sm:$0xff]  ;;  %v3304_v16 = vpop.eup %3303  ;;  %3313 = verf.f32 %v1245_v4 }
 0x117   :  { %3005 = vmatprep.subr.mxu1 %v1607_v19  ;;  %2968 = vmatpush3.msra.mxu0 %v1559_v7  ;;  %v1584_v19 = vld [vmem:[%s5299_s3 + $0x510] sm:$0xff]  ;;  %v1567_v7 = vld [vmem:[%s5299_s3 + $0x488] sm:$0xff]  ;;  %v1382_v20 = vmul.f32 %v1334_v11, %v1190_v9  ;;  %v1658_v9 = vld [vmem:[%s5299_s3 + $0x760] sm:$0xff] }
 0x118   :  { %3006 = vmatpush3.msra.mxu1 %v1591_v31  ;;  %2969 = vmatprep.subr.mxu0 %v1574_v8  ;;  %v1599_v31 = vld [vmem:[%s5299_s3 + $0x588] sm:$0xff] }
 0x119   :  { %2177 = vmatprep.mubr.f32.mxu0 %v1383_v12  ;;  %3007 = vmatprep.subr.mxu1 %v1606_v39  ;;  %v1551_v8 = vld [vmem:[%s5299_s3 + $0x408] sm:$0xff]  ;;  %v3306_v12 = vpop.eup %3305  ;;  %v1336_v39 = vadd.f32 1.0, %v3302_v63 }
 0x11a   :  { %2970 = vmatpush3.msra.mxu0 %v1558_v10  ;;  %3008 = vmatpush3.msra.mxu1 %v1590_v25  ;;  %v1566_v10 = vld [vmem:[%s5299_s3 + $0x480] sm:$0xff]  ;;  %v3308_v25 = vpop.eup %3307  ;;  %v1358_v35 = vadd.f32 1.0, %v3306_v12  ;;  %v1625_v12 = vld [vmem:[%s5299_s3 + $0x658] sm:$0xff] }
 0x11b   :  { %2971 = vmatprep.subr.mxu0 %v1573_v28  ;;  %3009 = vmatprep.subr.mxu1 %v1605_v15  ;;  %v1550_v28 = vld [vmem:[%s5299_s3 + $0x400] sm:$0xff]  ;;  %v1359_v15 = vadd.f32 1.0, %v3304_v16 }
 0x11c   :  { %2252 = vmatprep.mubr.f32.mxu1 %v1385_v29  ;;  %2972 = vmatpush3.msra.mxu0 %v1557_v49  ;;  %v1582_v29 = vld [vmem:[%s5299_s3 + $0x500] sm:$0xff]  ;;  %v3310_v49 = vpop.eup %3309 }
 0x11d   :  { %3010 = vmatpush3.msra.mxu1 %v1589_v33  ;;  %2973 = vmatprep.subr.mxu0 %v1572_v34  ;;  %v1214_v33 = vmul.f32 0.5, %v4384_v58  ;;  %v1645_v34 = vld [vmem:[%s5299_s3 + $0x6f8] sm:$0xff]  ;;  %v1642_v16 = vld [vmem:[%s5299_s3 + $0x6e0] sm:$0xff] }
 0x11e   :  { %3011 = vmatprep.subr.mxu1 %v1604_v37  ;;  %2974 = vmatpush3.msra.mxu0 %v1556_v38  ;;  %v1384_v37 = vmul.f32 %v1336_v39, %v1192_v3  ;;  %v1217_v38 = vmul.f32 0.5, %v4397_v60  ;;  %v1629_v58 = vld [vmem:[%s5299_s3 + $0x678] sm:$0xff]  ;;  %v1644_v60 = vld [vmem:[%s5299_s3 + $0x6f0] sm:$0xff] }
 0x11f   :  { %3012 = vmatpush3.msra.mxu1 %v1588_v14  ;;  %2975 = vmatprep.subr.mxu0 %v1571_v45  ;;  %v1677_v14 = vld [vmem:[%s5299_s3 + $0x7f8] sm:$0xff]  ;;  %v1361_v45 = vadd.f32 1.0, %v3308_v25  ;;  %v1640_v25 = vld [vmem:[%s5299_s3 + $0x6d0] sm:$0xff] }
 0x120   :  { %3013 = vmatprep.subr.mxu1 %v1603_v48  ;;  %2976 = vmatpush3.msra.mxu0 %v1555_v13  ;;  %v1661_v48 = vld [vmem:[%s5299_s3 + $0x778] sm:$0xff]  ;;  %v1407_v13 = vmul.f32 %v1359_v15, %v1215_v26 }
 0x121   :  { %3014 = vmatpush3.msra.mxu1 %v1587_v51  ;;  %2977 = vmatprep.subr.mxu0 %v1570_v2  ;;  %v1676_v51 = vld [vmem:[%s5299_s3 + $0x7f0] sm:$0xff]  ;;  %v1360_v2 = vadd.f32 1.0, %v3310_v49 }
 0x122   :  { %3015 = vmatprep.subr.mxu1 %v1602_v41  ;;  %2978 = vmatpush3.msra.mxu0 %v1554_v52  ;;  %v792_v41 = vpop.f32.mrf.mxu0  ;;  %v182_v52 = vrot.slane %v4178_v55, %v4057_v36  ;;  %v1627_v55 = vld [vmem:[%s5299_s3 + $0x668] sm:$0xff]  ;;  %v3312_v4 = vpop.eup %3311 }
 0x123   :  { %3016 = vmatpush3.msra.mxu1 %v1586_v53  ;;  %2979 = vmatprep.subr.mxu0 %v1569_v54  ;;  %v1628_v53 = vld [vmem:[%s5299_s3 + $0x670] sm:$0xff]  ;;  %v1406_v54 = vmul.f32 %v1358_v35, %v1214_v33  ;;  %v1408_v63 = vmul.f32 %v1360_v2, %v1216_v56  ;;  %v3314_v3 = vpop.eup %3313  ;;  %v1339_v26 = vadd.f32 1.0, %v3312_v4  ;;  %v1197_v33 = vmul.f32 0.5, %v4500_v18  ;;  %v1623_v35 = vld [vmem:[%s5299_s3 + $0x648] sm:$0xff]  ;;  %v1622_v56 = vld [vmem:[%s5299_s3 + $0x640] sm:$0xff] }
 0x124   :  { %3017 = vmatprep.subr.mxu1 %v1601_v1  ;;  %2980 = vmatpush3.msra.mxu0 %v1553_v59  ;;  %v1643_v1 = vld [vmem:[%s5299_s3 + $0x6e8] sm:$0xff]  ;;  %v1409_v59 = vmul.f32 %v1361_v45, %v1217_v38 }
 0x125   :  { %3018 = vmatpush3.msra.mxu1 %v1585_v62  ;;  %2981 = vmatprep.subr.mxu0 %v1568_v23  ;;  %v869_v62 = vpop.f32.mrf.mxu1  ;;  %v1659_v23 = vld [vmem:[%s5299_s3 + $0x768] sm:$0xff] }
 0x126   :  { %3019 = vmatprep.subr.mxu1 %v1600_v0  ;;  %2982 = vmatpush3.msra.mxu0 %v1552_v27  ;;  %v794_v0 = vpop.f32.mrf.mxu0  ;;  %v4596_v27 = vadd.f32 %v4426_v21, %v182_v52  ;;  %v1626_v21 = vld [vmem:[%s5299_s3 + $0x660] sm:$0xff]  ;;  %v1655_v18 = vld [vmem:[%s5299_s3 + $0x748] sm:$0xff] }
 0x127   :  { %3020 = vmatpush3.msra.mxu1 %v1584_v19  ;;  %2983 = vmatprep.subr.mxu0 %v1567_v7  ;;  %v4602_v19 = vadd.f32 %v4448_v32, %v190_v57  ;;  %v1674_v7 = vld [vmem:[%s5299_s3 + $0x7e0] sm:$0xff]  ;;  %v1641_v32 = vld [vmem:[%s5299_s3 + $0x6d8] sm:$0xff]  ;;  %v4617_v11 = vadd.f32 %v794_v0, %v4446_v30  ;;  %v1667_v0 = vld [vmem:[%s5299_s3 + $0x7a8] sm:$0xff] }
 0x128   :  { %3021 = vmatprep.subr.mxu1 %v1599_v31  ;;  %2984 = vmatpush3.msra.mxu0 %v1551_v8  ;;  %v871_v31 = vpop.f32.mrf.mxu1  ;;  %v1673_v8 = vld [vmem:[%s5299_s3 + $0x7d8] sm:$0xff]  ;;  %v1242_v39 = vmul.f32 0.70710677, %v4596_v27 }
 0x129   :  { %3022 = vmatpush3.msra.mxu1 %v1583_v47  ;;  %2985 = vmatprep.subr.mxu0 %v1566_v10  ;;  %v1195_v47 = vmul.f32 0.5, %v4479_v50  ;;  %v1657_v30 = vld [vmem:[%s5299_s3 + $0x758] sm:$0xff]  ;;  %v4630_v10 = vadd.f32 %v792_v41, %v182_v52  ;;  %v1672_v50 = vld [vmem:[%s5299_s3 + $0x7d0] sm:$0xff]  ;;  %v4643_v15 = vadd.f32 %v871_v31, %v4470_v46  ;;  %v1267_v49 = vmul.f32 0.70710677, %v4617_v11  ;;  %v1671_v46 = vld [vmem:[%s5299_s3 + $0x7c8] sm:$0xff] }
 0x12a   :  { %3023 = vmatprep.subr.mxu1 %v1598_v22  ;;  %2986 = vmatpush3.msra.mxu0 %v1550_v28  ;;  %v1244_v22 = vmul.f32 0.70710677, %v4602_v19  ;;  %v1624_v28 = vld [vmem:[%s5299_s3 + $0x650] sm:$0xff]  ;;  %3315 = verf.f32 %v1242_v39  ;;  %v1637_v41 = vld [vmem:[%s5299_s3 + $0x6b8] sm:$0xff]  ;;  %v1650_v31 = vld [vmem:[%s5299_s3 + $0x720] sm:$0xff] }
 0x12b   :  { %3024 = vmatpush3.msra.mxu1 %v1582_v29  ;;  %2178 = vmatmul.mubr.f32.vlgmr.msra.gmra.mxu0 %v1382_v20  ;;  %v1656_v29 = vld [vmem:[%s5299_s3 + $0x750] sm:$0xff]  ;;  %v1639_v20 = vld [vmem:[%s5299_s3 + $0x6c8] sm:$0xff]  ;;  %v1266_v38 = vmul.f32 0.70710677, %v4630_v10  ;;  %v1269_v45 = vmul.f32 0.70710677, %v4643_v15 }
 0x12c   :  { %2253 = vmatmul.mubr.f32.vlgmr.msra.gmra.mxu1 %v1384_v37  ;;  %3031 = vmatprep.subr.mxu0 %v1645_v34  ;;  %v4653_v34 = vadd.f32 %v869_v62, %v190_v57  ;;  %v1341_v37 = vadd.f32 1.0, %v3314_v3  ;;  %3317 = verf.f32 %v1244_v22  ;;  %v1669_v52 = vld [vmem:[%s5299_s3 + $0x7b8] sm:$0xff]  ;;  %v4699_v57 = vpop.f32.mrf.mxu1  ;;  %v1620_v62 = vld [vmem:[%s5299_s3 + $0x630] sm:$0xff] }
 0x12d   :  { %3069 = vmatprep.subr.mxu1 %v1677_v14  ;;  %3032 = vmatpush3.msra.mxu0 %v1629_v58  ;;  %v1638_v14 = vld [vmem:[%s5299_s3 + $0x6c0] sm:$0xff]  ;;  %v1387_v58 = vmul.f32 %v1339_v26, %v1195_v47  ;;  %3319 = verf.f32 %v1267_v49  ;;  %v1665_v39 = vld [vmem:[%s5299_s3 + $0x798] sm:$0xff]  ;;  %v1632_v26 = vld [vmem:[%s5299_s3 + $0x690] sm:$0xff] }
 0x12e   :  { %3070 = vmatpush3.msra.mxu1 %v1661_v48  ;;  %3033 = vmatprep.subr.mxu0 %v1644_v60  ;;  %v1670_v48 = vld [vmem:[%s5299_s3 + $0x7c0] sm:$0xff]  ;;  %v4675_v60 = vld [vmem:[%s5298_s2 + $0x10] sm:$0xff]  ;;  %v1268_v2 = vmul.f32 0.70710677, %v4653_v34  ;;  %3321 = verf.f32 %v1266_v38  ;;  %v1617_v47 = vld [vmem:[%s5299_s3 + $0x618] sm:$0xff] }
 0x12f   :  { %3071 = vmatprep.subr.mxu1 %v1676_v51  ;;  %2182 = vmatprep.mubr.f32.mxu0 %v1407_v13  ;;  %v4677_v13 = vpop.f32.mrf.mxu0  ;;  %v1654_v51 = vld [vmem:[%s5299_s3 + $0x740] sm:$0xff]  ;;  %3323 = verf.f32 %v1269_v45  ;;  %v1615_v38 = vld [vmem:[%s5299_s3 + $0x608] sm:$0xff] }
 0x130   :  { %3034 = vmatpush3.msra.mxu0 %v1628_v53  ;;  %3072 = vmatpush3.msra.mxu1 %v1660_v5  ;;  %v1389_v53 = vmul.f32 %v1341_v37, %v1197_v33  ;;  %v1621_v5 = vld [vmem:[%s5299_s3 + $0x638] sm:$0xff]  ;;  %3325 = verf.f32 %v1268_v2  ;;  %v1631_v33 = vld [vmem:[%s5299_s3 + $0x688] sm:$0xff]  ;;  %v1630_v45 = vld [vmem:[%s5299_s3 + $0x680] sm:$0xff] }
 0x131   :  { %2183 = vmatmul.mubr.f32.gmra.mxu0 %v1406_v54  ;;  %3035 = vmatprep.subr.mxu0 %v1643_v1  ;;  %v4697_v54 = vrot.slane %v4675_v60, %v4011_v44  ;;  %v1653_v1 = vld [vmem:[%s5299_s3 + $0x738] sm:$0xff]  ;;  %v1668_v44 = vld [vmem:[%s5299_s3 + $0x7b0] sm:$0xff]  ;;  %v1663_v37 = vld [vmem:[%s5299_s3 + $0x788] sm:$0xff] }
 0x132   :  { %3073 = vmatprep.subr.mxu1 %v1675_v24  ;;  %2257 = vmatprep.mubr.f32.mxu1 %v1409_v59  ;;  %v1636_v59 = vld [vmem:[%s5299_s3 + $0x6b0] sm:$0xff]  ;;  %v942_v24 = vpop.f32.mrf.mxu0 }
 0x133   :  { %3036 = vmatpush3.msra.mxu0 %v1627_v55  ;;  %3074 = vmatpush3.msra.mxu1 %v1659_v23  ;;  %v1652_v55 = vld [vmem:[%s5299_s3 + $0x730] sm:$0xff]  ;;  %v1635_v23 = vld [vmem:[%s5299_s3 + $0x6a8] sm:$0xff]  ;;  %v4730_v4 = vadd.f32 %v942_v24, %v4697_v54  ;;  %v1221_v24 = vmul.f32 0.5, %v4643_v15 }
 0x134   :  { %2258 = vmatmul.mubr.f32.gmra.mxu1 %v1408_v63  ;;  %3037 = vmatprep.subr.mxu0 %v1642_v16  ;;  %v4721_v63 = vrot.slane %v4675_v60, %v4014_v17  ;;  %v1619_v16 = vld [vmem:[%s5299_s3 + $0x628] sm:$0xff]  ;;  %v1708_v15 = vld [vmem:[%s5299_s3 + $0x8f0] sm:$0xff] }
 0x135   :  { %3075 = vmatprep.subr.mxu1 %v1674_v7  ;;  %3038 = vmatpush3.msra.mxu0 %v1626_v21  ;;  %v1019_v7 = vpop.f32.mrf.mxu1  ;;  %v1651_v17 = vld [vmem:[%s5299_s3 + $0x728] sm:$0xff]  ;;  %v1634_v21 = vld [vmem:[%s5299_s3 + $0x6a0] sm:$0xff]  ;;  %v1247_v3 = vmul.f32 0.70710677, %v4730_v4 }
 0x136   :  { %3076 = vmatpush3.msra.mxu1 %v1658_v9  ;;  %3039 = vmatprep.subr.mxu0 %v1641_v32  ;;  %v1666_v9 = vld [vmem:[%s5299_s3 + $0x7a0] sm:$0xff] }
 0x137   :  { %3077 = vmatprep.subr.mxu1 %v1673_v8  ;;  %3040 = vmatpush3.msra.mxu0 %v1625_v12  ;;  %v1618_v32 = vld [vmem:[%s5299_s3 + $0x620] sm:$0xff]  ;;  %v1633_v8 = vld [vmem:[%s5299_s3 + $0x698] sm:$0xff]  ;;  %v4751_v12 = vadd.f32 %v1019_v7, %v4721_v63  ;;  %3327 = verf.f32 %v1247_v3  ;;  %v1739_v3 = vld [vmem:[%s5299_s3 + $0x9e8] sm:$0xff] }
 0x138   :  { %3078 = vmatpush3.msra.mxu1 %v1657_v30  ;;  %3041 = vmatprep.subr.mxu0 %v1640_v25  ;;  %v3316_v30 = vpop.eup %3315  ;;  %v1649_v25 = vld [vmem:[%s5299_s3 + $0x718] sm:$0xff] }
 0x139   :  { %3079 = vmatprep.subr.mxu1 %v1672_v50  ;;  %3042 = vmatpush3.msra.mxu0 %v1624_v28  ;;  %v3318_v22 = vpop.eup %3317  ;;  %v1664_v50 = vld [vmem:[%s5299_s3 + $0x790] sm:$0xff]  ;;  %v1249_v49 = vmul.f32 0.70710677, %v4751_v12 }
 0x13a   :  { %3080 = vmatpush3.msra.mxu1 %v1656_v29  ;;  %3043 = vmatprep.subr.mxu0 %v1639_v20  ;;  %v1616_v28 = vld [vmem:[%s5299_s3 + $0x610] sm:$0xff]  ;;  %v3320_v29 = vpop.eup %3319 }
 0x13b   :  { %3081 = vmatprep.subr.mxu1 %v1671_v46  ;;  %3044 = vmatpush3.msra.mxu0 %v1623_v35  ;;  %v1648_v20 = vld [vmem:[%s5299_s3 + $0x710] sm:$0xff]  ;;  %v1194_v46 = vmul.f32 0.5, %v4596_v27  ;;  %v1338_v35 = vadd.f32 1.0, %v3316_v30  ;;  %v1647_v27 = vld [vmem:[%s5299_s3 + $0x708] sm:$0xff]  ;;  %v1363_v2 = vadd.f32 1.0, %v3320_v29  ;;  %3329 = verf.f32 %v1249_v49  ;;  %v1738_v29 = vld [vmem:[%s5299_s3 + $0x9e0] sm:$0xff] }
 0x13c   :  { %3082 = vmatpush3.msra.mxu1 %v1655_v18  ;;  %3045 = vmatprep.subr.mxu0 %v1638_v14  ;;  %v3322_v18 = vpop.eup %3321  ;;  %v1196_v14 = vmul.f32 0.5, %v4602_v19  ;;  %v1662_v19 = vld [vmem:[%s5299_s3 + $0x780] sm:$0xff] }
 0x13d   :  { %2327 = vmatprep.mubr.f32.mxu0 %v1387_v58  ;;  %3083 = vmatprep.subr.mxu1 %v1670_v48  ;;  %v1340_v58 = vadd.f32 1.0, %v3318_v22  ;;  %v3324_v48 = vpop.eup %3323  ;;  %v1706_v22 = vld [vmem:[%s5299_s3 + $0x8e0] sm:$0xff] }
 0x13e   :  { %3046 = vmatpush3.msra.mxu0 %v1622_v56  ;;  %3084 = vmatpush3.msra.mxu1 %v1654_v51  ;;  %v1219_v56 = vmul.f32 0.5, %v4617_v11  ;;  %v1614_v51 = vld [vmem:[%s5299_s3 + $0x600] sm:$0xff]  ;;  %v1386_v11 = vmul.f32 %v1338_v35, %v1194_v46  ;;  %v1737_v46 = vld [vmem:[%s5299_s3 + $0x9d8] sm:$0xff] }
 0x13f   :  { %3047 = vmatprep.subr.mxu0 %v1637_v41  ;;  %3085 = vmatprep.subr.mxu1 %v1669_v52  ;;  %v1646_v41 = vld [vmem:[%s5299_s3 + $0x700] sm:$0xff]  ;;  %v3326_v52 = vpop.eup %3325  ;;  %v1689_v35 = vld [vmem:[%s5299_s3 + $0x858] sm:$0xff] }
 0x140   :  { %2402 = vmatprep.mubr.f32.mxu1 %v1389_v53  ;;  %3048 = vmatpush3.msra.mxu0 %v1621_v5  ;;  %v1218_v53 = vmul.f32 0.5, %v4630_v10  ;;  %v1709_v5 = vld [vmem:[%s5299_s3 + $0x8f8] sm:$0xff]  ;;  %v1364_v7 = vadd.f32 1.0, %v3326_v52  ;;  %v1722_v49 = vld [vmem:[%s5299_s3 + $0x960] sm:$0xff] }
 0x141   :  { %3086 = vmatpush3.msra.mxu1 %v1653_v1  ;;  %3049 = vmatprep.subr.mxu0 %v1636_v59  ;;  %v1362_v1 = vadd.f32 1.0, %v3322_v18  ;;  %v1388_v59 = vmul.f32 %v1340_v58, %v1196_v14  ;;  %v1693_v10 = vld [vmem:[%s5299_s3 + $0x878] sm:$0xff]  ;;  %v1199_v18 = vmul.f32 0.5, %v4730_v4  ;;  %v1704_v58 = vld [vmem:[%s5299_s3 + $0x8d0] sm:$0xff] }
 0x142   :  { %3087 = vmatprep.subr.mxu1 %v1668_v44  ;;  %3050 = vmatpush3.msra.mxu0 %v1620_v62  ;;  %v1741_v44 = vld [vmem:[%s5299_s3 + $0x9f8] sm:$0xff]  ;;  %v1365_v62 = vadd.f32 1.0, %v3324_v48  ;;  %v1736_v4 = vld [vmem:[%s5299_s3 + $0x9d0] sm:$0xff] }
 0x143   :  { %3088 = vmatpush3.msra.mxu1 %v1652_v55  ;;  %3051 = vmatprep.subr.mxu0 %v1635_v23  ;;  %v1725_v55 = vld [vmem:[%s5299_s3 + $0x978] sm:$0xff]  ;;  %v1411_v23 = vmul.f32 %v1363_v2, %v1219_v56  ;;  %v1688_v48 = vld [vmem:[%s5299_s3 + $0x850] sm:$0xff]  ;;  %v1703_v2 = vld [vmem:[%s5299_s3 + $0x8c8] sm:$0xff] }
 0x144   :  { %3089 = vmatprep.subr.mxu1 %v1667_v0  ;;  %3052 = vmatpush3.msra.mxu0 %v1619_v16  ;;  %v1220_v0 = vmul.f32 0.5, %v4653_v34  ;;  %v1740_v16 = vld [vmem:[%s5299_s3 + $0x9f0] sm:$0xff] }
 0x145   :  { %3090 = vmatpush3.msra.mxu1 %v1651_v17  ;;  %3053 = vmatprep.subr.mxu0 %v1634_v21  ;;  %v946_v17 = vpop.f32.mrf.mxu0  ;;  %v198_v21 = vrot.slane %v4675_v60, %v4000_v42  ;;  %v1724_v34 = vld [vmem:[%s5299_s3 + $0x970] sm:$0xff]  ;;  %v1707_v42 = vld [vmem:[%s5299_s3 + $0x8e8] sm:$0xff] }
 0x146   :  { %3091 = vmatprep.subr.mxu1 %v1666_v9  ;;  %3054 = vmatpush3.msra.mxu0 %v1618_v32  ;;  %v1692_v9 = vld [vmem:[%s5299_s3 + $0x870] sm:$0xff]  ;;  %v1410_v32 = vmul.f32 %v1362_v1, %v1218_v53  ;;  %v1412_v30 = vmul.f32 %v1364_v7, %v1220_v0  ;;  %v1702_v1 = vld [vmem:[%s5299_s3 + $0x8c0] sm:$0xff]  ;;  %v1733_v0 = vld [vmem:[%s5299_s3 + $0x9b8] sm:$0xff]  ;;  %v4940_v7 = vrot.slane %v4675_v60, %v4027_v61 }
 0x147   :  { %3092 = vmatpush3.msra.mxu1 %v1650_v31  ;;  %3055 = vmatprep.subr.mxu0 %v1633_v8  ;;  %v206_v31 = vrot.slane %v4675_v60, %v4003_v43  ;;  %v1413_v8 = vmul.f32 %v1365_v62, %v1221_v24  ;;  %v1691_v43 = vld [vmem:[%s5299_s3 + $0x868] sm:$0xff]  ;;  %v4881_v14 = vadd.f32 %v946_v17, %v198_v21  ;;  %v1686_v62 = vld [vmem:[%s5299_s3 + $0x840] sm:$0xff]  ;;  %v1700_v61 = vld [vmem:[%s5299_s3 + $0x8b0] sm:$0xff] }
 0x148   :  { %3093 = vmatprep.subr.mxu1 %v1665_v39  ;;  %3056 = vmatpush3.msra.mxu0 %v1617_v47  ;;  %v1023_v39 = vpop.f32.mrf.mxu1  ;;  %v1723_v47 = vld [vmem:[%s5299_s3 + $0x968] sm:$0xff] }
 0x149   :  { %3094 = vmatpush3.msra.mxu1 %v1649_v25  ;;  %3057 = vmatprep.subr.mxu0 %v1632_v26  ;;  %v948_v25 = vpop.f32.mrf.mxu0  ;;  %v4847_v26 = vadd.f32 %v4677_v13, %v198_v21  ;;  %v1690_v13 = vld [vmem:[%s5299_s3 + $0x860] sm:$0xff]  ;;  %v4904_v52 = vadd.f32 %v1023_v39, %v206_v31  ;;  %v1685_v21 = vld [vmem:[%s5299_s3 + $0x838] sm:$0xff] }
 0x14a   :  { %3095 = vmatprep.subr.mxu1 %v1664_v50  ;;  %3058 = vmatpush3.msra.mxu0 %v1616_v28  ;;  %v3328_v50 = vpop.eup %3327  ;;  %v4853_v28 = vadd.f32 %v4699_v57, %v206_v31  ;;  %v1705_v57 = vld [vmem:[%s5299_s3 + $0x8d8] sm:$0xff]  ;;  %v1684_v31 = vld [vmem:[%s5299_s3 + $0x830] sm:$0xff] }
 0x14b   :  { %3096 = vmatpush3.msra.mxu1 %v1648_v20  ;;  %3059 = vmatprep.subr.mxu0 %v1631_v33  ;;  %v4868_v20 = vadd.f32 %v948_v25, %v4697_v54  ;;  %v1025_v33 = vpop.f32.mrf.mxu1  ;;  %v1721_v54 = vld [vmem:[%s5299_s3 + $0x958] sm:$0xff]  ;;  %v4919_v24 = vpop.f32.mrf.mxu0  ;;  %v1698_v25 = vld [vmem:[%s5299_s3 + $0x8a0] sm:$0xff] }
 0x14c   :  { %3097 = vmatprep.subr.mxu1 %v1663_v37  ;;  %3060 = vmatpush3.msra.mxu0 %v1615_v38  ;;  %v3330_v37 = vpop.eup %3329  ;;  %v1246_v38 = vmul.f32 0.70710677, %v4847_v26  ;;  %v4894_v56 = vadd.f32 %v1025_v33, %v4721_v63  ;;  %v1735_v63 = vld [vmem:[%s5299_s3 + $0x9c8] sm:$0xff]  ;;  %v1729_v33 = vld [vmem:[%s5299_s3 + $0x998] sm:$0xff] }
 0x14d   :  { %3098 = vmatpush3.msra.mxu1 %v1647_v27  ;;  %3061 = vmatprep.subr.mxu0 %v1630_v45  ;;  %v1343_v27 = vadd.f32 1.0, %v3328_v50  ;;  %v1248_v45 = vmul.f32 0.70710677, %v4853_v28  ;;  %v1345_v53 = vadd.f32 1.0, %v3330_v37  ;;  %v4942_v17 = vpop.f32.mrf.mxu1  ;;  %v1682_v50 = vld [vmem:[%s5299_s3 + $0x820] sm:$0xff]  ;;  %v1713_v37 = vld [vmem:[%s5299_s3 + $0x918] sm:$0xff] }
 0x14e   :  { %3099 = vmatprep.subr.mxu1 %v1662_v19  ;;  %3062 = vmatpush3.msra.mxu0 %v1614_v51  ;;  %v1720_v19 = vld [vmem:[%s5299_s3 + $0x950] sm:$0xff]  ;;  %v1271_v51 = vmul.f32 0.70710677, %v4868_v20  ;;  %3331 = verf.f32 %v1246_v38 }
 0x14f   :  { %3100 = vmatpush3.msra.mxu1 %v1646_v41  ;;  %2328 = vmatmul.mubr.f32.vlgmr.msra.gmra.mxu0 %v1386_v11  ;;  %v1201_v41 = vmul.f32 0.5, %v4751_v12  ;;  %v1687_v11 = vld [vmem:[%s5299_s3 + $0x848] sm:$0xff]  ;;  %3333 = verf.f32 %v1248_v45  ;;  %v1696_v38 = vld [vmem:[%s5299_s3 + $0x890] sm:$0xff] }
 0x150   :  { %2403 = vmatmul.mubr.f32.vlgmr.msra.gmra.mxu1 %v1388_v59  ;;  %3107 = vmatprep.subr.mxu0 %v1709_v5  ;;  %v1270_v5 = vmul.f32 0.70710677, %v4881_v14  ;;  %v1719_v12 = vld [vmem:[%s5299_s3 + $0x948] sm:$0xff]  ;;  %v1391_v59 = vmul.f32 %v1343_v27, %v1199_v18  ;;  %3335 = verf.f32 %v1271_v51  ;;  %v1680_v27 = vld [vmem:[%s5299_s3 + $0x810] sm:$0xff] }
 0x151   :  { %3145 = vmatprep.subr.mxu1 %v1741_v44  ;;  %3108 = vmatpush3.msra.mxu0 %v1693_v10  ;;  %v1273_v44 = vmul.f32 0.70710677, %v4894_v56  ;;  %v1734_v10 = vld [vmem:[%s5299_s3 + $0x9c0] sm:$0xff] }
 0x152   :  { %3146 = vmatpush3.msra.mxu1 %v1725_v55  ;;  %3109 = vmatprep.subr.mxu0 %v1708_v15  ;;  %v1718_v55 = vld [vmem:[%s5299_s3 + $0x940] sm:$0xff]  ;;  %v1272_v15 = vmul.f32 0.70710677, %v4904_v52  ;;  %3337 = verf.f32 %v1270_v5 }
 0x153   :  { %3147 = vmatprep.subr.mxu1 %v1740_v16  ;;  %2332 = vmatprep.mubr.f32.mxu0 %v1411_v23  ;;  %v1701_v23 = vld [vmem:[%s5299_s3 + $0x8b8] sm:$0xff]  ;;  %v1393_v16 = vmul.f32 %v1345_v53, %v1201_v41  ;;  %3339 = verf.f32 %v1273_v44  ;;  %v1679_v41 = vld [vmem:[%s5299_s3 + $0x808] sm:$0xff]  ;;  %v1694_v5 = vld [vmem:[%s5299_s3 + $0x880] sm:$0xff] }
 0x154   :  { %3110 = vmatpush3.msra.mxu0 %v1692_v9  ;;  %3148 = vmatpush3.msra.mxu1 %v1724_v34  ;;  %v1096_v9 = vpop.f32.mrf.mxu0  ;;  %v1717_v34 = vld [vmem:[%s5299_s3 + $0x938] sm:$0xff]  ;;  %3341 = verf.f32 %v1272_v15 }
 0x155   :  { %2333 = vmatmul.mubr.f32.gmra.mxu0 %v1410_v32  ;;  %3111 = vmatprep.subr.mxu0 %v1707_v42  ;;  %v1732_v32 = vld [vmem:[%s5299_s3 + $0x9b0] sm:$0xff]  ;;  %v4961_v42 = vrot.slane %v4675_v60, %v4033_v6  ;;  %v4970_v39 = vadd.f32 %v1096_v9, %v4940_v7  ;;  %v1731_v6 = vld [vmem:[%s5299_s3 + $0x9a8] sm:$0xff]  ;;  %v1773_v15 = vld [vmem:[%s5299_s3 + $0xaf8] sm:$0xff] }
 0x156   :  { %3149 = vmatprep.subr.mxu1 %v1739_v3  ;;  %2407 = vmatprep.mubr.f32.mxu1 %v1413_v8  ;;  %v1716_v8 = vld [vmem:[%s5299_s3 + $0x930] sm:$0xff]  ;;  %v1699_v3 = vld [vmem:[%s5299_s3 + $0x8a8] sm:$0xff] }
 0x157   :  { %3112 = vmatpush3.msra.mxu0 %v1691_v43  ;;  %3150 = vmatpush3.msra.mxu1 %v1723_v47  ;;  %v1173_v43 = vpop.f32.mrf.mxu1  ;;  %v1683_v47 = vld [vmem:[%s5299_s3 + $0x828] sm:$0xff] }
 0x158   :  { %2408 = vmatmul.mubr.f32.gmra.mxu1 %v1412_v30  ;;  %3113 = vmatprep.subr.mxu0 %v1706_v22  ;;  %v1715_v30 = vld [vmem:[%s5299_s3 + $0x928] sm:$0xff]  ;;  %v1730_v22 = vld [vmem:[%s5299_s3 + $0x9a0] sm:$0xff] }
 0x159   :  { %3151 = vmatprep.subr.mxu1 %v1738_v29  ;;  %3114 = vmatpush3.msra.mxu0 %v1690_v13  ;;  %v4991_v29 = vadd.f32 %v1173_v43, %v4961_v42  ;;  %v1251_v13 = vmul.f32 0.70710677, %v4970_v39  ;;  %v1804_v43 = vld [vmem:[%s5299_s3 + $0xbf0] sm:$0xff] }
 0x15a   :  { %3152 = vmatpush3.msra.mxu1 %v1722_v49  ;;  %3115 = vmatprep.subr.mxu0 %v1705_v57  ;;  %v1714_v49 = vld [vmem:[%s5299_s3 + $0x920] sm:$0xff]  ;;  %v1697_v57 = vld [vmem:[%s5299_s3 + $0x898] sm:$0xff] }
 0x15b   :  { %3153 = vmatprep.subr.mxu1 %v1737_v46  ;;  %3116 = vmatpush3.msra.mxu0 %v1689_v35  ;;  %v1681_v46 = vld [vmem:[%s5299_s3 + $0x818] sm:$0xff]  ;;  %v3332_v35 = vpop.eup %3331  ;;  %3343 = verf.f32 %v1251_v13 }
 0x15c   :  { %3154 = vmatpush3.msra.mxu1 %v1721_v54  ;;  %3117 = vmatprep.subr.mxu0 %v1704_v58  ;;  %v3334_v18 = vpop.eup %3333  ;;  %v1253_v54 = vmul.f32 0.70710677, %v4991_v29  ;;  %v1728_v58 = vld [vmem:[%s5299_s3 + $0x990] sm:$0xff]  ;;  %v1342_v51 = vadd.f32 1.0, %v3332_v35 }
 0x15d   :  { %3155 = vmatprep.subr.mxu1 %v1736_v4  ;;  %3118 = vmatpush3.msra.mxu0 %v1688_v48  ;;  %v3336_v45 = vpop.eup %3335  ;;  %v1712_v4 = vld [vmem:[%s5299_s3 + $0x910] sm:$0xff]  ;;  %v1695_v48 = vld [vmem:[%s5299_s3 + $0x888] sm:$0xff]  ;;  %v1344_v53 = vadd.f32 1.0, %v3334_v18 }
 0x15e   :  { %3156 = vmatpush3.msra.mxu1 %v1720_v19  ;;  %3119 = vmatprep.subr.mxu0 %v1703_v2  ;;  %v1198_v19 = vmul.f32 0.5, %v4847_v26  ;;  %v1727_v2 = vld [vmem:[%s5299_s3 + $0x988] sm:$0xff]  ;;  %3345 = verf.f32 %v1253_v54  ;;  %v1367_v44 = vadd.f32 1.0, %v3336_v45  ;;  %v1769_v54 = vld [vmem:[%s5299_s3 + $0xad8] sm:$0xff]  ;;  %v1203_v45 = vmul.f32 0.5, %v4970_v39 }
 0x15f   :  { %3157 = vmatprep.subr.mxu1 %v1735_v63  ;;  %3120 = vmatpush3.msra.mxu0 %v1687_v11  ;;  %v3338_v63 = vpop.eup %3337  ;;  %v1200_v11 = vmul.f32 0.5, %v4853_v28  ;;  %v1711_v26 = vld [vmem:[%s5299_s3 + $0x908] sm:$0xff]  ;;  %v1726_v28 = vld [vmem:[%s5299_s3 + $0x980] sm:$0xff]  ;;  %v1785_v39 = vld [vmem:[%s5299_s3 + $0xb58] sm:$0xff] }
 0x160   :  { %3158 = vmatpush3.msra.mxu1 %v1719_v12  ;;  %3121 = vmatprep.subr.mxu0 %v1702_v1  ;;  %v3340_v12 = vpop.eup %3339  ;;  %v1223_v1 = vmul.f32 0.5, %v4868_v20  ;;  %v1390_v20 = vmul.f32 %v1342_v51, %v1198_v19 }
 0x161   :  { %2477 = vmatprep.mubr.f32.mxu0 %v1391_v59  ;;  %3159 = vmatprep.subr.mxu1 %v1734_v10  ;;  %v1678_v59 = vld [vmem:[%s5299_s3 + $0x800] sm:$0xff]  ;;  %v1369_v9 = vadd.f32 1.0, %v3340_v12  ;;  %v1784_v12 = vld [vmem:[%s5299_s3 + $0xb50] sm:$0xff] }
 0x162   :  { %3122 = vmatpush3.msra.mxu0 %v1686_v62  ;;  %3160 = vmatpush3.msra.mxu1 %v1718_v55  ;;  %v1710_v10 = vld [vmem:[%s5299_s3 + $0x900] sm:$0xff]  ;;  %v3342_v62 = vpop.eup %3341  ;;  %v1222_v55 = vmul.f32 0.5, %v4881_v14  ;;  %v1757_v14 = vld [vmem:[%s5299_s3 + $0xa78] sm:$0xff] }
 0x163   :  { %3123 = vmatprep.subr.mxu0 %v1701_v23  ;;  %3161 = vmatprep.subr.mxu1 %v1733_v0  ;;  %v1366_v23 = vadd.f32 1.0, %v3338_v63  ;;  %v1392_v0 = vmul.f32 %v1344_v53, %v1200_v11  ;;  %v1800_v11 = vld [vmem:[%s5299_s3 + $0xbd0] sm:$0xff] }
 0x164   :  { %2552 = vmatprep.mubr.f32.mxu1 %v1393_v16  ;;  %3124 = vmatpush3.msra.mxu0 %v1685_v21  ;;  %v1225_v16 = vmul.f32 0.5, %v4894_v56  ;;  %v1805_v21 = vld [vmem:[%s5299_s3 + $0xbf8] sm:$0xff]  ;;  %v1772_v56 = vld [vmem:[%s5299_s3 + $0xaf0] sm:$0xff] }
 0x165   :  { %3162 = vmatpush3.msra.mxu1 %v1717_v34  ;;  %3125 = vmatprep.subr.mxu0 %v1700_v61  ;;  %v1100_v34 = vpop.f32.mrf.mxu0  ;;  %v1789_v61 = vld [vmem:[%s5299_s3 + $0xb78] sm:$0xff]  ;;  %v1752_v53 = vld [vmem:[%s5299_s3 + $0xa50] sm:$0xff] }
 0x166   :  { %3163 = vmatprep.subr.mxu1 %v1732_v32  ;;  %3126 = vmatpush3.msra.mxu0 %v1684_v31  ;;  %v1415_v32 = vmul.f32 %v1367_v44, %v1223_v1  ;;  %v1224_v31 = vmul.f32 0.5, %v4904_v52  ;;  %v1756_v52 = vld [vmem:[%s5299_s3 + $0xa70] sm:$0xff]  ;;  %v1767_v1 = vld [vmem:[%s5299_s3 + $0xac8] sm:$0xff] }
 0x167   :  { %3164 = vmatpush3.msra.mxu1 %v1716_v8  ;;  %3127 = vmatprep.subr.mxu0 %v1699_v3  ;;  %v214_v8 = vrot.slane %v4675_v60, %v4057_v36  ;;  %v1177_v3 = vpop.f32.mrf.mxu1  ;;  %v1788_v36 = vld [vmem:[%s5299_s3 + $0xb70] sm:$0xff] }
 0x168   :  { %3165 = vmatprep.subr.mxu1 %v1731_v6  ;;  %3128 = vmatpush3.msra.mxu0 %v1683_v47  ;;  %v1368_v6 = vadd.f32 1.0, %v3342_v62  ;;  %v222_v47 = vrot.slane %v4675_v60, %v4060_v40  ;;  %v1803_v40 = vld [vmem:[%s5299_s3 + $0xbe8] sm:$0xff] }
 0x169   :  { %3166 = vmatpush3.msra.mxu1 %v1715_v30  ;;  %3129 = vmatprep.subr.mxu0 %v1698_v25  ;;  %v1414_v30 = vmul.f32 %v1366_v23, %v1222_v55  ;;  %v1771_v25 = vld [vmem:[%s5299_s3 + $0xae8] sm:$0xff]  ;;  %v5087_v60 = vadd.f32 %v4919_v24, %v214_v8  ;;  %v1179_v13 = vpop.f32.mrf.mxu1  ;;  %v1770_v24 = vld [vmem:[%s5299_s3 + $0xae0] sm:$0xff]  ;;  %v5128_v51 = vadd.f32 %v1100_v34, %v214_v8  ;;  %v1781_v34 = vld [vmem:[%s5299_s3 + $0xb38] sm:$0xff] }
 0x16a   :  { %3167 = vmatprep.subr.mxu1 %v1730_v22  ;;  %3130 = vmatpush3.msra.mxu0 %v1682_v50  ;;  %v1417_v22 = vmul.f32 %v1369_v9, %v1225_v16  ;;  %v1102_v50 = vpop.f32.mrf.mxu0  ;;  %v5096_v35 = vadd.f32 %v4942_v17, %v222_v47  ;;  %v1754_v17 = vld [vmem:[%s5299_s3 + $0xa60] sm:$0xff]  ;;  %v5111_v18 = vadd.f32 %v1179_v13, %v4961_v42  ;;  %v1801_v42 = vld [vmem:[%s5299_s3 + $0xbd8] sm:$0xff]  ;;  %v1783_v62 = vld [vmem:[%s5299_s3 + $0xb48] sm:$0xff] }
 0x16b   :  { %3168 = vmatpush3.msra.mxu1 %v1714_v49  ;;  %3131 = vmatprep.subr.mxu0 %v1697_v57  ;;  %v1755_v49 = vld [vmem:[%s5299_s3 + $0xa68] sm:$0xff]  ;;  %v5137_v63 = vadd.f32 %v1177_v3, %v222_v47  ;;  %v1766_v55 = vld [vmem:[%s5299_s3 + $0xac0] sm:$0xff]  ;;  %v1749_v9 = vld [vmem:[%s5299_s3 + $0xa38] sm:$0xff] }
 0x16c   :  { %3169 = vmatprep.subr.mxu1 %v1729_v33  ;;  %3132 = vmatpush3.msra.mxu0 %v1681_v46  ;;  %v1787_v57 = vld [vmem:[%s5299_s3 + $0xb68] sm:$0xff]  ;;  %v1416_v33 = vmul.f32 %v1368_v6, %v1224_v31  ;;  %v3344_v46 = vpop.eup %3343  ;;  %v1252_v19 = vmul.f32 0.70710677, %v5096_v35  ;;  %v1750_v23 = vld [vmem:[%s5299_s3 + $0xa40] sm:$0xff]  ;;  %v1780_v31 = vld [vmem:[%s5299_s3 + $0xb30] sm:$0xff] }
 0x16d   :  { %3170 = vmatpush3.msra.mxu1 %v1713_v37  ;;  %3133 = vmatprep.subr.mxu0 %v1696_v38  ;;  %v5102_v37 = vadd.f32 %v1102_v50, %v4940_v7  ;;  %v1802_v38 = vld [vmem:[%s5299_s3 + $0xbe0] sm:$0xff]  ;;  %v1763_v8 = vld [vmem:[%s5299_s3 + $0xaa8] sm:$0xff]  ;;  %v1793_v50 = vld [vmem:[%s5299_s3 + $0xb98] sm:$0xff] }
 0x16e   :  { %3171 = vmatprep.subr.mxu1 %v1728_v58  ;;  %3134 = vmatpush3.msra.mxu0 %v1680_v27  ;;  %v1786_v7 = vld [vmem:[%s5299_s3 + $0xb60] sm:$0xff]  ;;  %v3346_v58 = vpop.eup %3345  ;;  %v1250_v27 = vmul.f32 0.70710677, %v5087_v60  ;;  %v1795_v3 = vld [vmem:[%s5299_s3 + $0xba8] sm:$0xff] }
 0x16f   :  { %3172 = vmatpush3.msra.mxu1 %v1712_v4  ;;  %3135 = vmatprep.subr.mxu0 %v1695_v48  ;;  %v1753_v4 = vld [vmem:[%s5299_s3 + $0xa58] sm:$0xff]  ;;  %v1347_v48 = vadd.f32 1.0, %v3344_v46  ;;  %v1779_v6 = vld [vmem:[%s5299_s3 + $0xb28] sm:$0xff]  ;;  %v1762_v47 = vld [vmem:[%s5299_s3 + $0xaa0] sm:$0xff] }
 0x170   :  { %3173 = vmatprep.subr.mxu1 %v1727_v2  ;;  %3136 = vmatpush3.msra.mxu0 %v1679_v41  ;;  %v1768_v2 = vld [vmem:[%s5299_s3 + $0xad0] sm:$0xff]  ;;  %v1275_v41 = vmul.f32 0.70710677, %v5102_v37  ;;  %3347 = verf.f32 %v1250_v27  ;;  %v1791_v27 = vld [vmem:[%s5299_s3 + $0xb88] sm:$0xff] }
 0x171   :  { %3174 = vmatpush3.msra.mxu1 %v1711_v26  ;;  %3137 = vmatprep.subr.mxu0 %v1694_v5  ;;  %v1205_v26 = vmul.f32 0.5, %v4991_v29  ;;  %v1277_v5 = vmul.f32 0.70710677, %v5111_v18  ;;  %v1799_v29 = vld [vmem:[%s5299_s3 + $0xbc8] sm:$0xff]  ;;  %v1395_v44 = vmul.f32 %v1347_v48, %v1203_v45  ;;  %3349 = verf.f32 %v1252_v19  ;;  %v1792_v46 = vld [vmem:[%s5299_s3 + $0xb90] sm:$0xff] }
 0x172   :  { %3175 = vmatprep.subr.mxu1 %v1726_v28  ;;  %3138 = vmatpush3.msra.mxu0 %v1678_v59  ;;  %v1349_v28 = vadd.f32 1.0, %v3346_v58  ;;  %v1751_v59 = vld [vmem:[%s5299_s3 + $0xa48] sm:$0xff]  ;;  %3351 = verf.f32 %v1275_v41  ;;  %v1227_v19 = vmul.f32 0.5, %v5102_v37  ;;  %v1742_v37 = vld [vmem:[%s5299_s3 + $0xa00] sm:$0xff] }
 0x173   :  { %3176 = vmatpush3.msra.mxu1 %v1710_v10  ;;  %2478 = vmatmul.mubr.f32.vlgmr.msra.gmra.mxu0 %v1390_v20  ;;  %v1274_v10 = vmul.f32 0.70710677, %v5128_v51  ;;  %v1276_v20 = vmul.f32 0.70710677, %v5137_v63  ;;  %3353 = verf.f32 %v1277_v5  ;;  %v1743_v45 = vld [vmem:[%s5299_s3 + $0xa08] sm:$0xff] }
 0x174   :  { %2553 = vmatmul.mubr.f32.vlgmr.msra.gmra.mxu1 %v1392_v0  ;;  %3183 = vmatprep.subr.mxu0 %v1773_v15  ;;  %v1798_v15 = vld [vmem:[%s5299_s3 + $0xbc0] sm:$0xff]  ;;  %v1397_v16 = vmul.f32 %v1349_v28, %v1205_v26  ;;  %v1228_v28 = vmul.f32 0.5, %v5137_v63 }
 0x175   :  { %3221 = vmatprep.subr.mxu1 %v1805_v21  ;;  %3184 = vmatpush3.msra.mxu0 %v1757_v14  ;;  %v1782_v0 = vld [vmem:[%s5299_s3 + $0xb40] sm:$0xff]  ;;  %v1765_v21 = vld [vmem:[%s5299_s3 + $0xab8] sm:$0xff]  ;;  %3355 = verf.f32 %v1274_v10 }
 0x176   :  { %3222 = vmatpush3.msra.mxu1 %v1789_v61  ;;  %3185 = vmatprep.subr.mxu0 %v1772_v56  ;;  %v1797_v14 = vld [vmem:[%s5299_s3 + $0xbb8] sm:$0xff]  ;;  %3357 = verf.f32 %v1276_v20  ;;  %v1764_v61 = vld [vmem:[%s5299_s3 + $0xab0] sm:$0xff]  ;;  %v1774_v26 = vld [vmem:[%s5299_s3 + $0xb00] sm:$0xff] }
 0x177   :  { %3223 = vmatprep.subr.mxu1 %v1804_v43  ;;  %2482 = vmatprep.mubr.f32.mxu0 %v1415_v32  ;;  %v1796_v56 = vld [vmem:[%s5299_s3 + $0xbb0] sm:$0xff]  ;;  %v1747_v43 = vld [vmem:[%s5299_s3 + $0xa28] sm:$0xff] }
 0x178   :  { %3186 = vmatpush3.msra.mxu0 %v1756_v52  ;;  %3224 = vmatpush3.msra.mxu1 %v1788_v36  ;;  %v1748_v32 = vld [vmem:[%s5299_s3 + $0xa30] sm:$0xff]  ;;  %v1794_v52 = vld [vmem:[%s5299_s3 + $0xba0] sm:$0xff] }
 0x179   :  { %2483 = vmatmul.mubr.f32.gmra.mxu0 %v1414_v30  ;;  %3187 = vmatprep.subr.mxu0 %v1771_v25  ;;  %v1746_v36 = vld [vmem:[%s5299_s3 + $0xa20] sm:$0xff]  ;;  %v1761_v25 = vld [vmem:[%s5299_s3 + $0xa98] sm:$0xff] }
 0x17a   :  { %3225 = vmatprep.subr.mxu1 %v1803_v40  ;;  %2557 = vmatprep.mubr.f32.mxu1 %v1417_v22  ;;  %v1778_v30 = vld [vmem:[%s5299_s3 + $0xb20] sm:$0xff]  ;;  %v1745_v40 = vld [vmem:[%s5299_s3 + $0xa18] sm:$0xff] }
 0x17b   :  { %3188 = vmatpush3.msra.mxu0 %v1755_v49  ;;  %3226 = vmatpush3.msra.mxu1 %v1787_v57  ;;  %v1777_v49 = vld [vmem:[%s5299_s3 + $0xb18] sm:$0xff]  ;;  %v1760_v57 = vld [vmem:[%s5299_s3 + $0xa90] sm:$0xff] }
 0x17c   :  { %2558 = vmatmul.mubr.f32.gmra.mxu1 %v1416_v33  ;;  %3189 = vmatprep.subr.mxu0 %v1770_v24  ;;  %v1744_v24 = vld [vmem:[%s5299_s3 + $0xa10] sm:$0xff] }
 0x17d   :  { %3227 = vmatprep.subr.mxu1 %v1802_v38  ;;  %3190 = vmatpush3.msra.mxu0 %v1754_v17  ;;  %v3348_v22 = vpop.eup %3347  ;;  %v1776_v17 = vld [vmem:[%s5299_s3 + $0xb10] sm:$0xff] }
 0x17e   :  { %3228 = vmatpush3.msra.mxu1 %v1786_v7  ;;  %3191 = vmatprep.subr.mxu0 %v1769_v54  ;;  %v3350_v13 = vpop.eup %3349  ;;  %v1759_v7 = vld [vmem:[%s5299_s3 + $0xa88] sm:$0xff]  ;;  %v1202_v54 = vmul.f32 0.5, %v5087_v60  ;;  %v1346_v58 = vadd.f32 1.0, %v3348_v22  ;;  %v2800_v22 = vld [vmem:[%s5300_s4] ss:$0 sm:$0xff] }
 0x17f   :  { %3229 = vmatprep.subr.mxu1 %v1801_v42  ;;  %3192 = vmatpush3.msra.mxu0 %v1753_v4  ;;  %v3352_v33 = vpop.eup %3351  ;;  %v1204_v4 = vmul.f32 0.5, %v5096_v35  ;;  %v1348_v48 = vadd.f32 1.0, %v3350_v13  ;;  %v1775_v60 = vld [vmem:[%s5299_s3 + $0xb08] sm:$0xff]  ;;  %v1790_v35 = vld [vmem:[%s5299_s3 + $0xb80] sm:$0xff] }
 0x180   :  { %3230 = vmatpush3.msra.mxu1 %v1785_v39  ;;  %3193 = vmatprep.subr.mxu0 %v1768_v2  ;;  %v3354_v38 = vpop.eup %3353  ;;  %v1758_v39 = vld [vmem:[%s5299_s3 + $0xa80] sm:$0xff]  ;;  %v1371_v2 = vadd.f32 1.0, %v3352_v33  ;;  %v1394_v5 = vmul.f32 %v1346_v58, %v1202_v54 }
 0x181   :  { %3231 = vmatprep.subr.mxu1 %v1800_v11  ;;  %3194 = vmatpush3.msra.mxu0 %v1752_v53  ;;  %v1229_v11 = vmul.f32 0.5, %v5111_v18  ;;  %v1373_v53 = vadd.f32 1.0, %v3354_v38  ;;  %v1226_v18 = vmul.f32 0.5, %v5128_v51 }
 0x182   :  { %3232 = vmatpush3.msra.mxu1 %v1784_v12  ;;  %3195 = vmatprep.subr.mxu0 %v1767_v1  ;;  %v3356_v42 = vpop.eup %3355  ;;  %v1396_v1 = vmul.f32 %v1348_v48, %v1204_v4 }
 0x183   :  { %3233 = vmatprep.subr.mxu1 %v1799_v29  ;;  %3196 = vmatpush3.msra.mxu0 %v1751_v59  ;;  %v3358_v41 = vpop.eup %3357  ;;  %v1370_v12 = vadd.f32 1.0, %v3356_v42  ;;  %v1419_v29 = vmul.f32 %v1371_v2, %v1227_v19 }
 0x184   :  { %2627 = vmatprep.mubr.f32.mxu0 %v1395_v44  ;;  %3234 = vmatpush3.msra.mxu1 %v1783_v62  ;;  %v1372_v59 = vadd.f32 1.0, %v3358_v41  ;;  %v1421_v44 = vmul.f32 %v1373_v53, %v1229_v11 }
 0x185   :  { %3197 = vmatprep.subr.mxu0 %v1766_v55  ;;  %3235 = vmatprep.subr.mxu1 %v1798_v15  ;;  %v1418_v10 = vmul.f32 %v1370_v12, %v1226_v18 }
 0x186   :  { %3198 = vmatpush3.msra.mxu0 %v1750_v23  ;;  %3236 = vmatpush3.msra.mxu1 %v1782_v0  ;;  %v1420_v62 = vmul.f32 %v1372_v59, %v1228_v28 }
 0x187   :  { %2702 = vmatprep.mubr.f32.mxu1 %v1397_v16  ;;  %3199 = vmatprep.subr.mxu0 %v1765_v21 }
 0x188   :  { %3237 = vmatprep.subr.mxu1 %v1797_v14  ;;  %3200 = vmatpush3.msra.mxu0 %v1749_v9 }
 0x189   :  { %3238 = vmatpush3.msra.mxu1 %v1781_v34  ;;  %3201 = vmatprep.subr.mxu0 %v1764_v61 }
 0x18a   :  { %3239 = vmatprep.subr.mxu1 %v1796_v56  ;;  %3202 = vmatpush3.msra.mxu0 %v1748_v32 }
 0x18b   :  { %3240 = vmatpush3.msra.mxu1 %v1780_v31  ;;  %3203 = vmatprep.subr.mxu0 %v1763_v8 }
 0x18c   :  { %3241 = vmatprep.subr.mxu1 %v1795_v3  ;;  %3204 = vmatpush3.msra.mxu0 %v1747_v43 }
 0x18d   :  { %3242 = vmatpush3.msra.mxu1 %v1779_v6  ;;  %3205 = vmatprep.subr.mxu0 %v1762_v47 }
 0x18e   :  { %3243 = vmatprep.subr.mxu1 %v1794_v52  ;;  %3206 = vmatpush3.msra.mxu0 %v1746_v36 }
 0x18f   :  { %3244 = vmatpush3.msra.mxu1 %v1778_v30  ;;  %3207 = vmatprep.subr.mxu0 %v1761_v25 }
 0x190   :  { %3245 = vmatprep.subr.mxu1 %v1793_v50  ;;  %3208 = vmatpush3.msra.mxu0 %v1745_v40 }
 0x191   :  { %3246 = vmatpush3.msra.mxu1 %v1777_v49  ;;  %3209 = vmatprep.subr.mxu0 %v1760_v57 }
 0x192   :  { %3247 = vmatprep.subr.mxu1 %v1792_v46  ;;  %3210 = vmatpush3.msra.mxu0 %v1744_v24 }
 0x193   :  { %3248 = vmatpush3.msra.mxu1 %v1776_v17  ;;  %3211 = vmatprep.subr.mxu0 %v1759_v7 }
 0x194   :  { %3249 = vmatprep.subr.mxu1 %v1791_v27  ;;  %3212 = vmatpush3.msra.mxu0 %v1743_v45 }
 0x195   :  { %3250 = vmatpush3.msra.mxu1 %v1775_v60  ;;  %3213 = vmatprep.subr.mxu0 %v1758_v39 }
 0x196   :  { %3251 = vmatprep.subr.mxu1 %v1790_v35  ;;  %3214 = vmatpush3.msra.mxu0 %v1742_v37 }
 0x197   :  { %3252 = vmatpush3.msra.mxu1 %v1774_v26  ;;  %2628 = vmatmul.mubr.f32.vlgmr.msra.gmra.mxu0 %v1394_v5 }
 0x198   :  { %2703 = vmatmul.mubr.f32.vlgmr.msra.gmra.mxu1 %v1396_v1  ;;  %2632 = vmatprep.mubr.f32.mxu0 %v1419_v29 }
 0x199   :  { %2707 = vmatprep.mubr.f32.mxu1 %v1421_v44 }
 0x19b   :  { %2633 = vmatmul.mubr.f32.gmra.mxu0 %v1418_v10 }
 0x19c   :  { %2708 = vmatmul.mubr.f32.gmra.mxu1 %v1420_v62 }
 0x1a4   :  { %v2835_v51 = vpop.f32.mrf.mxu0 }
 0x1a5   :  { %v2873_v23 = vpop.f32.mrf.mxu1 }
 0x1a6   :  { %v2836_v20 = vpop.f32.mrf.mxu0 }
 0x1a7   :  { %v2874_v0 = vpop.f32.mrf.mxu1  ;;  %v2837_v30 = vadd.f32 %v2836_v20, %v2835_v51 }
 0x1a8   :  { %v2875_v57 = vadd.f32 %v2874_v0, %v2873_v23 }
 0x1a9   :  { %v1880_v40 = vadd.f32 %v2837_v30, %v2800_v22 }
 0x1ab   :  { %v1955_v38 = vadd.f32 %v2875_v57, %v1880_v40 }
 0x1ad   :  { %v2838_v55 = vpop.f32.mrf.mxu0 }
 0x1af   :  { %v2839_v15 = vpop.f32.mrf.mxu0 }
 0x1b0   :  { %v2876_v21 = vpop.f32.mrf.mxu1  ;;  %v2840_v13 = vadd.f32 %v2839_v15, %v2838_v55 }
 0x1b2   :  { %v2877_v9 = vpop.f32.mrf.mxu1  ;;  %v1885_v17 = vadd.f32 %v2840_v13, %v2800_v22 }
 0x1b3   :  { %v2878_v7 = vadd.f32 %v2877_v9, %v2876_v21 }
 0x1b5   :  { %v1960_v42 = vadd.f32 %v2878_v7, %v1885_v17 }
 0x1c7   :  { %v2911_v63 = vpop.f32.mrf.mxu0 }
 0x1c8   :  { %v2949_v34 = vpop.f32.mrf.mxu1 }
 0x1c9   :  { %v2912_v16 = vpop.f32.mrf.mxu0 }
 0x1ca   :  { %v2950_v32 = vpop.f32.mrf.mxu1  ;;  %v2913_v33 = vadd.f32 %v2912_v16, %v2911_v63 }
 0x1cb   :  { %v2951_v4 = vadd.f32 %v2950_v32, %v2949_v34 }
 0x1cc   :  { %v2030_v54 = vadd.f32 %v2913_v33, %v1955_v38 }
 0x1cd   :  { %v2914_v14 = vpop.f32.mrf.mxu0 }
 0x1ce   :  { %v2105_v39 = vadd.f32 %v2951_v4, %v2030_v54 }
 0x1cf   :  { %v2915_v61 = vpop.f32.mrf.mxu0 }
 0x1d0   :  { %v2952_v31 = vpop.f32.mrf.mxu1  ;;  %v2916_v58 = vadd.f32 %v2915_v61, %v2914_v14 }
 0x1d2   :  { %v2953_v3 = vpop.f32.mrf.mxu1  ;;  %v2035_v2 = vadd.f32 %v2916_v58, %v1960_v42 }
 0x1d3   :  { %v2954_v41 = vadd.f32 %v2953_v3, %v2952_v31 }
 0x1d5   :  { %v2110_v26 = vadd.f32 %v2954_v41, %v2035_v2 }
 0x1eb   :  { %v2987_v56 = vpop.f32.mrf.mxu0 }
 0x1ec   :  { %v3025_v6 = vpop.f32.mrf.mxu1 }
 0x1ed   :  { %v2988_v8 = vpop.f32.mrf.mxu0 }
 0x1ee   :  { %v3026_v52 = vpop.f32.mrf.mxu1  ;;  %v2989_v48 = vadd.f32 %v2988_v8, %v2987_v56 }
 0x1ef   :  { %v3027_v5 = vadd.f32 %v3026_v52, %v3025_v6 }
 0x1f0   :  { %v2180_v11 = vadd.f32 %v2989_v48, %v2105_v39 }
 0x1f1   :  { %v2990_v43 = vpop.f32.mrf.mxu0 }
 0x1f2   :  { %v2255_v1 = vadd.f32 %v3027_v5, %v2180_v11  ;;  %v2802_v5 = vld [vmem:[%s5302_s6] ss:$0 sm:$0xff] }
 0x1f3   :  { %v2991_v47 = vpop.f32.mrf.mxu0 }
 0x1f4   :  { %v3028_v25 = vpop.f32.mrf.mxu1  ;;  %v2992_v35 = vadd.f32 %v2991_v47, %v2990_v43 }
 0x1f6   :  { %v3029_v49 = vpop.f32.mrf.mxu1  ;;  %v2185_v28 = vadd.f32 %v2992_v35, %v2110_v26 }
 0x1f7   :  { %v3030_v29 = vadd.f32 %v3029_v49, %v3028_v25 }
 0x1f9   :  { %v2260_v51 = vadd.f32 %v3030_v29, %v2185_v28 }
 0x20f   :  { %v3063_v36 = vpop.f32.mrf.mxu0 }
 0x210   :  { %v3101_v46 = vpop.f32.mrf.mxu1 }
 0x211   :  { %v3064_v50 = vpop.f32.mrf.mxu0 }
 0x212   :  { %v3102_v27 = vpop.f32.mrf.mxu1  ;;  %v3065_v18 = vadd.f32 %v3064_v50, %v3063_v36 }
 0x213   :  { %v3103_v20 = vadd.f32 %v3102_v27, %v3101_v46 }
 0x214   :  { %v2330_v44 = vadd.f32 %v3065_v18, %v2255_v1 }
 0x215   :  { %v3066_v24 = vpop.f32.mrf.mxu0 }
 0x216   :  { %v2405_v63 = vadd.f32 %v3103_v20, %v2330_v44 }
 0x217   :  { %v3067_v45 = vpop.f32.mrf.mxu0 }
 0x218   :  { %v3104_v19 = vpop.f32.mrf.mxu1  ;;  %v3068_v10 = vadd.f32 %v3067_v45, %v3066_v24 }
 0x21a   :  { %v3105_v37 = vpop.f32.mrf.mxu1  ;;  %v2335_v0 = vadd.f32 %v3068_v10, %v2260_v51 }
 0x21b   :  { %v3106_v16 = vadd.f32 %v3105_v37, %v3104_v19 }
 0x21d   :  { %v2410_v61 = vadd.f32 %v3106_v16, %v2335_v0 }
 0x233   :  { %v3139_v60 = vpop.f32.mrf.mxu0 }
 0x234   :  { %v3177_v12 = vpop.f32.mrf.mxu1 }
 0x235   :  { %v3140_v53 = vpop.f32.mrf.mxu0 }
 0x236   :  { %v3178_v62 = vpop.f32.mrf.mxu1  ;;  %v3141_v55 = vadd.f32 %v3140_v53, %v3139_v60  ;;  %v2801_v53 = vld [vmem:[%s5301_s5] ss:$0 sm:$0xff] }
 0x237   :  { %v3179_v56 = vadd.f32 %v3178_v62, %v3177_v12 }
 0x238   :  { %v2480_v21 = vadd.f32 %v3141_v55, %v2405_v63 }
 0x239   :  { %v3142_v59 = vpop.f32.mrf.mxu0 }
 0x23a   :  { %v2555_v8 = vadd.f32 %v3179_v56, %v2480_v21 }
 0x23b   :  { %v3143_v23 = vpop.f32.mrf.mxu0 }
 0x23c   :  { %v3180_v15 = vpop.f32.mrf.mxu1  ;;  %v3144_v14 = vadd.f32 %v3143_v23, %v3142_v59 }
 0x23e   :  { %v3181_v9 = vpop.f32.mrf.mxu1  ;;  %v2485_v3 = vadd.f32 %v3144_v14, %v2410_v61 }
 0x23f   :  { %v3182_v43 = vadd.f32 %v3181_v9, %v3180_v15 }
 0x241   :  { %v2560_v50 = vadd.f32 %v3182_v43, %v2485_v3 }
 0x257   :  { %v3215_v34 = vpop.f32.mrf.mxu0 }
 0x258   :  { %v3253_v32 = vpop.f32.mrf.mxu1 }
 0x259   :  { %v3216_v31 = vpop.f32.mrf.mxu0 }
 0x25a   :  { %v3217_v6 = vadd.f32 %v3216_v31, %v3215_v34  ;;  %v3254_v47 = vpop.f32.mrf.mxu1 }
 0x25b   :  { %v3218_v52 = vpop.f32.mrf.mxu0  ;;  %v3255_v30 = vadd.f32 %v3254_v47, %v3253_v32 }
 0x25c   :  { %v2630_v36 = vadd.f32 %v3217_v6, %v2555_v8  ;;  %v3256_v25 = vpop.f32.mrf.mxu1 }
 0x25d   :  { %v3219_v22 = vpop.f32.mrf.mxu0 }
 0x25e   :  { %v3220_v40 = vadd.f32 %v3219_v22, %v3218_v52  ;;  %v3257_v13 = vpop.f32.mrf.mxu1  ;;  %v2705_v49 = vadd.f32 %v3255_v30, %v2630_v36 }
 0x25f   :  { %v3258_v33 = vadd.f32 %v3257_v13, %v3256_v25 }
 0x260   :  { %v2635_v57 = vadd.f32 %v3220_v40, %v2560_v50  ;;  %v2713_v46 = vsel %vm251_vm0, %v2705_v49, 0.0 }
 0x261   :  { %2714 = vadd.xlane.f32.xlu0 %v2713_v46 }
 0x262   :  { %v2710_v24 = vadd.f32 %v3258_v33, %v2635_v57 }
 0x264   :  { %v2716_v38 = vsel %vm251_vm0, %v2710_v24, 0.0 }
 0x265   :  { %2717 = vadd.xlane.f32.xlu0 %v2716_v38 }
 0x2ea   :  { %v2715_v17 = vpop.xlane.xlu0 %2714 }
 0x2eb   :  { %v2720_v7 = vmul.f32 0.03125, %v2715_v17 }
 0x2ed   :  { %v2722_v54 = vsub.f32 %v2705_v49, %v2720_v7 }
 0x2ee   :  { %v2718_v58 = vpop.xlane.xlu0 %2717 }
 0x2ef   :  { %v2721_v27 = vmul.f32 0.03125, %v2718_v58  ;;  %v2724_v45 = vmul.f32 %v2722_v54, %v2722_v54 }
 0x2f1   :  { %v2723_v42 = vsub.f32 %v2710_v24, %v2721_v27  ;;  %v2726_v4 = vsel %vm251_vm0, %v2724_v45, 0.0 }
 0x2f2   :  { %2727 = vadd.xlane.f32.xlu1 %v2726_v4 }
 0x2f3   :  { %v2725_v48 = vmul.f32 %v2723_v42, %v2723_v42 }
 0x2f5   :  { %v2729_v19 = vsel %vm251_vm0, %v2725_v48, 0.0 }
 0x2f6   :  { %2730 = vadd.xlane.f32.xlu1 %v2729_v19 }
 0x37b   :  { %v2728_v60 = vpop.xlane.xlu1 %2727 }
 0x37c   :  { %v2732_v39 = vmul.f32 0.03125, %v2728_v60 }
 0x37e   :  { %v2734_v2 = vadd.f32 1e-05, %v2732_v39 }
 0x37f   :  { %v2731_v41 = vpop.xlane.xlu1 %2730 }
 0x380   :  { %3359 = vrsqrt.f32 %v2734_v2  ;;  %v2733_v11 = vmul.f32 0.03125, %v2731_v41 }
 0x382   :  { %v2735_v35 = vadd.f32 1e-05, %v2733_v11 }
 0x384   :  { %3361 = vrsqrt.f32 %v2735_v35 }
 0x38d   :  { %v3360_v37 = vpop.eup %3359 }
 0x38e   :  { %v2738_v26 = vmul.f32 %v3360_v37, %v2722_v54 }
 0x390   :  { %v2747_v18 = vmul.f32 %v2801_v53, %v2738_v26 }
 0x391   :  { %v3362_v12 = vpop.eup %3361 }
 0x392   :  { %v2739_v1 = vmul.f32 %v3362_v12, %v2723_v42  ;;  %v2756_v28 = vadd.f32 %v2802_v5, %v2747_v18 }
 0x394   :  { %v2748_v29 = vmul.f32 %v2801_v53, %v2739_v1  ;;  %2758 = vst.msk [vmem:[#allocation2] sm:$0xff] %vm251_vm0, %v2756_v28 }
 0x396   :  { %v2757_v59 = vadd.f32 %v2802_v5, %v2748_v29 }
 0x398   :  { %2759 = vst.msk [vmem:[#allocation2 + $0x8] sm:$0xff] %vm251_vm0, %v2757_v59 }
 0x399   :  { %3374 = shalt.err (!%p3371_p4)
}
 0x39a   :  { %s3387_s5 = smov 128   ;;  %s3388_s6 = smov 8  }
 0x39b   :  { %2771 = dma.vmem_to_hbm [thread:$0]  %s2766_s21, 256, %s5303_s7, [#allocation3], %s3387_s5, %s3387_s5, %s3388_s6  }
 0x39c   :  { %3383 = dma.done.wait [#allocation3], 256  }
 0x39d   :  { %3384 = vsyncadd [#allocation3], 4294967040 }
 0x39e   :  { %2775 = vsyncpa [#allocation3], 1 }

</bundles_post_ra>
